<compile_context>
chip_gen: v7x
topology: tpu7x:2x2x1
jax: 0.10.0
libtpu: 0.0.40
codegen_flags: <defaults>
</compile_context>

<pallas_src>
import jax
import jax.numpy as jnp
from jax.experimental import pallas as pl
from jax.experimental.pallas import tpu as pltpu

NEG_SLOPE = 0.01  # nn.LeakyReLU default


# ----------------------------------------------------------------------------
# Bilinear resize matching F.interpolate(mode='bilinear', align_corners=False).
# TODO(synk): fuse this into the Pallas kernel as two small row/col
# interpolation matmuls to drop the last intermediate HBM tensor.
# ----------------------------------------------------------------------------
def bilinear_resize_nhwc(x, out_h, out_w):
    n, in_h, in_w, c = x.shape
    if (in_h, in_w) == (out_h, out_w):
        return x
    scale_h = in_h / out_h
    scale_w = in_w / out_w

    ys = (jnp.arange(out_h, dtype=jnp.float32) + 0.5) * scale_h - 0.5
    xs = (jnp.arange(out_w, dtype=jnp.float32) + 0.5) * scale_w - 0.5
    ys = jnp.maximum(ys, 0.0)
    xs = jnp.maximum(xs, 0.0)

    y0 = jnp.minimum(jnp.floor(ys).astype(jnp.int32), in_h - 1)
    x0 = jnp.minimum(jnp.floor(xs).astype(jnp.int32), in_w - 1)
    y1 = jnp.minimum(y0 + 1, in_h - 1)
    x1 = jnp.minimum(x0 + 1, in_w - 1)

    wy = (ys - y0.astype(jnp.float32))[None, :, None, None]
    wx = (xs - x0.astype(jnp.float32))[None, None, :, None]

    tl = x[:, y0][:, :, x0]
    tr = x[:, y0][:, :, x1]
    bl = x[:, y1][:, :, x0]
    br = x[:, y1][:, :, x1]

    top = tl * (1.0 - wx) + tr * wx
    bot = bl * (1.0 - wx) + br * wx
    return top * (1.0 - wy) + bot * wy


# ----------------------------------------------------------------------------
# Pallas kernel: fused concat + reflect-pad + 3x3 conv + bias + LeakyReLU.
# Grid = (N,): one full image per step.
#   up_ref, l0_ref : (1, H, W, C)   bf16  (channels-last, split-K inputs)
#   w_ref          : (9*2C, Cout)   bf16  rows ordered (kh, kw, cin)
#   b_ref          : (1, Cout)      f32
#   o_ref          : (1, Cout, H*W) f32   lane-dense, NCHW-flattened output
# ----------------------------------------------------------------------------
def decoder_conv_kernel(up_ref, l0_ref, w_ref, b_ref, o_ref):
    _, H, W, C = up_ref.shape
    C2 = 2 * C

    # Fused channel concat (VMEM only — the (H, W, 2C) tensor never hits HBM).
    x = jnp.concatenate([up_ref[0], l0_ref[0]], axis=-1)            # (H, W, 2C)

    # Fused reflect padding (pad=1), matching padding_mode='reflect'.
    x = jnp.concatenate([x[1:2], x, x[H - 2:H - 1]], axis=0)        # (H+2, W, 2C)
    x = jnp.concatenate([x[:, 1:2], x, x[:, W - 2:W - 1]], axis=1)  # (H+2, W+2, 2C)

    # im2col: gather the 9 shifted windows into one (H*W, 9*2C) slab so the
    # conv is a single fat MXU matmul instead of 9 matmuls with K=2C.
    taps = [x[kh:kh + H, kw:kw + W, :] for kh in range(3) for kw in range(3)]
    col = jnp.concatenate(taps, axis=-1).reshape(H * W, 9 * C2)     # (H*W, 9*2C)

    acc = jnp.dot(col, w_ref[...], preferred_element_type=jnp.float32)  # (H*W, Cout) f32
    acc = acc + b_ref[...]                                  # bias, f32
    acc = jnp.where(acc >= 0, acc, NEG_SLOPE * acc)         # LeakyReLU(0.01), f32 epilogue

    # Channel-major store: lanes = H*W (lane-dense), and it is already NCHW.
    o_ref[0] = acc.T.astype(o_ref.dtype)                    # (Cout, H*W)


def decoder_conv_pallas(up, l0_skip, weight, bias):
    """up, l0_skip: (N, H, W, C) bf16; weight: (3,3,2C,Cout) HWIO; bias: (Cout,)."""
    N, H, W, C = up.shape
    Cout = weight.shape[-1]
    K = 9 * 2 * C
    M = H * W

    w2d = weight.reshape(K, Cout).astype(jnp.bfloat16)   # rows ordered (kh, kw, cin)
    b2d = bias.reshape(1, Cout).astype(jnp.float32)

    flops = 2 * N * M * K * Cout
    bytes_accessed = (2 * N * M * C * 2          # up + l0 skip (bf16)
                      + K * Cout * 2 + Cout * 4  # weights + bias
                      + N * Cout * M * 4)        # f32 output

    out_flat = pl.pallas_call(
        decoder_conv_kernel,
        out_shape=jax.ShapeDtypeStruct((N, Cout, M), jnp.float32),
        grid=(N,),
        in_specs=[
            pl.BlockSpec((1, H, W, C), lambda n: (n, 0, 0, 0)),
            pl.BlockSpec((1, H, W, C), lambda n: (n, 0, 0, 0)),
            pl.BlockSpec((K, Cout), lambda n: (0, 0)),
            pl.BlockSpec((1, Cout), lambda n: (0, 0)),
        ],
        out_specs=pl.BlockSpec((1, Cout, M), lambda n: (n, 0, 0)),
        compiler_params=pltpu.CompilerParams(
            dimension_semantics=("parallel",),      # lets v7x shard N over 2 TCs
            vmem_limit_bytes=32 * 1024 * 1024),
        cost_estimate=pl.CostEstimate(
            flops=flops, transcendentals=0, bytes_accessed=bytes_accessed),
    )(up, l0_skip, w2d, b2d)

    return out_flat.reshape(N, Cout, H, W)                 # free reshape: already NCHW


# ----------------------------------------------------------------------------
# DecoderBlock forward (NCHW in / NCHW out, matching the PyTorch module)
# ----------------------------------------------------------------------------
def decoder_block_forward(l0, l1, weight, bias):
    N, C, H, W = l0.shape
    l0_nhwc = jnp.transpose(l0, (0, 2, 3, 1))
    l1_nhwc = jnp.transpose(l1, (0, 2, 3, 1))

    up = bilinear_resize_nhwc(l1_nhwc, H, W)               # (N, H, W, C) f32

    # bf16 at the kernel boundary (halves HBM traffic, doubles MXU rate);
    # accumulation and epilogue stay f32 inside the kernel.
    up16 = up.astype(jnp.bfloat16)
    l016 = l0_nhwc.astype(jnp.bfloat16)
    return decoder_conv_pallas(up16, l016, weight, bias)   # NCHW out


# Pure-JAX reference (XLA conv). conv_dtype=bfloat16 mirrors the kernel's
# numeric policy (bf16 matmul inputs, f32 accumulate) for a tight check.
def decoder_block_reference(l0, l1, weight, bias, conv_dtype=jnp.float32):
    N, C, H, W = l0.shape
    l0_nhwc = jnp.transpose(l0, (0, 2, 3, 1))
    l1_nhwc = jnp.transpose(l1, (0, 2, 3, 1))
    up = bilinear_resize_nhwc(l1_nhwc, H, W)
    x = jnp.concatenate([up, l0_nhwc], axis=-1)
    x_padded = jnp.pad(x, ((0, 0), (1, 1), (1, 1), (0, 0)), mode="reflect")
    out = jax.lax.conv_general_dilated(
        x_padded.astype(conv_dtype), weight.astype(conv_dtype),
        window_strides=(1, 1), padding="VALID",
        dimension_numbers=("NHWC", "HWIO", "NHWC"),
        preferred_element_type=jnp.float32)
    out = out + bias.astype(jnp.float32)
    out = jnp.where(out >= 0, out, NEG_SLOPE * out)
    return jnp.transpose(out, (0, 3, 1, 2))


if __name__ == "__main__":
    bc = 4                      # base_channels
    N, H, W = 2, 16, 16         # l0 spatial
    Hl, Wl = 8, 8               # l1 (lower-res) spatial

    key = jax.random.PRNGKey(0)
    k0, k1, kw, kb = jax.random.split(key, 4)
    l0 = jax.random.normal(k0, (N, bc, H, W), dtype=jnp.float32)
    l1 = jax.random.normal(k1, (N, bc, Hl, Wl), dtype=jnp.float32)

    # Synthetic Conv2d(bc*2 -> bc, 3x3, bias=True) parameters, HWIO layout.
    weight = 0.1 * jax.random.normal(kw, (3, 3, 2 * bc, bc), dtype=jnp.float32)
    bias = 0.1 * jax.random.normal(kb, (bc,), dtype=jnp.float32)

    out = jax.jit(decoder_block_forward)(l0, l1, weight, bias)
    out = jax.block_until_ready(out)
    assert out.shape == (N, bc, H, W), out.shape

    # 1) Tight structural check against an XLA reference with the same numeric
    #    policy (bf16 matmul inputs, f32 accumulate): isolates kernel logic.
    ref_bf16 = jax.jit(
        lambda a, b, c, d: decoder_block_reference(a, b, c, d,
                                                   conv_dtype=jnp.bfloat16)
    )(l0, l1, weight, bias)
    ref_bf16 = jax.block_until_ready(ref_bf16)
    err_logic = float(jnp.max(jnp.abs(out - ref_bf16)))
    assert err_logic < 2e-3, f"kernel-logic max abs error {err_logic}"

    # 2) Loose sanity check against the full-f32 reference (bounds the bf16
    #    quantization error introduced by the performance-motivated cast).
    ref_f32 = jax.jit(decoder_block_reference)(l0, l1, weight, bias)
    ref_f32 = jax.block_until_ready(ref_f32)
    err_quant = float(jnp.max(jnp.abs(out - ref_f32)))
    assert err_quant < 1e-1, f"bf16 quantization max abs error {err_quant}"

    print("KERNEL_OK")
</pallas_src>

<mosaic_0001>
module attributes {stable_mosaic.version = 11 : i64} {
  func.func @decoder_conv_kernel(%arg0: i32, %arg1: memref<1x16x16x4xbf16, #tpu.memory_space<vmem>>, %arg2: memref<1x16x16x4xbf16, #tpu.memory_space<vmem>>, %arg3: memref<72x4xbf16, #tpu.memory_space<vmem>>, %arg4: memref<1x4xf32, #tpu.memory_space<vmem>>, %arg5: memref<1x4x256xf32, #tpu.memory_space<vmem>>) attributes {dimension_semantics = [#tpu.dimension_semantics<parallel>], iteration_bounds = array<i64: 2>, scalar_prefetch = 0 : i64, scratch_operands = 0 : i64, tpu.core_type = #tpu.core_type<tc>, window_params = [{transform_indices = @transform_0, window_bounds = array<i64: 1, 16, 16, 4>}, {transform_indices = @transform_1, window_bounds = array<i64: 1, 16, 16, 4>}, {pipeline_mode = #tpu.pipeline_mode<synchronous>, transform_indices = @transform_2, window_bounds = array<i64: 72, 4>}, {pipeline_mode = #tpu.pipeline_mode<synchronous>, transform_indices = @transform_3, window_bounds = array<i64: 1, 4>}, {transform_indices = @transform_4, window_bounds = array<i64: 1, 4, 256>}]} {
    %c0 = arith.constant 0 : index
    %c0_0 = arith.constant 0 : index
    %c0_1 = arith.constant 0 : index
    %c0_2 = arith.constant 0 : index
    %0 = vector.load %arg1[%c0, %c0_0, %c0_1, %c0_2] : memref<1x16x16x4xbf16, #tpu.memory_space<vmem>>, vector<1x16x16x4xbf16>
    %1 = vector.shape_cast %0 : vector<1x16x16x4xbf16> to vector<16x16x4xbf16>
    %c0_3 = arith.constant 0 : index
    %c0_4 = arith.constant 0 : index
    %c0_5 = arith.constant 0 : index
    %c0_6 = arith.constant 0 : index
    %2 = vector.load %arg2[%c0_3, %c0_4, %c0_5, %c0_6] : memref<1x16x16x4xbf16, #tpu.memory_space<vmem>>, vector<1x16x16x4xbf16>
    %3 = vector.shape_cast %2 : vector<1x16x16x4xbf16> to vector<16x16x4xbf16>
    %4 = tpu.concatenate %1, %3 in 2 : vector<16x16x4xbf16>, vector<16x16x4xbf16> -> vector<16x16x8xbf16>
    %5 = vector.extract_strided_slice %4 {offsets = [1, 0, 0], sizes = [1, 16, 8], strides = [1, 1, 1]} : vector<16x16x8xbf16> to vector<1x16x8xbf16>
    %6 = vector.extract_strided_slice %4 {offsets = [14, 0, 0], sizes = [1, 16, 8], strides = [1, 1, 1]} : vector<16x16x8xbf16> to vector<1x16x8xbf16>
    %7 = tpu.concatenate %5, %4, %6 in 0 : vector<1x16x8xbf16>, vector<16x16x8xbf16>, vector<1x16x8xbf16> -> vector<18x16x8xbf16>
    %8 = vector.extract_strided_slice %7 {offsets = [0, 1, 0], sizes = [18, 1, 8], strides = [1, 1, 1]} : vector<18x16x8xbf16> to vector<18x1x8xbf16>
    %9 = vector.extract_strided_slice %7 {offsets = [0, 14, 0], sizes = [18, 1, 8], strides = [1, 1, 1]} : vector<18x16x8xbf16> to vector<18x1x8xbf16>
    %10 = tpu.concatenate %8, %7, %9 in 1 : vector<18x1x8xbf16>, vector<18x16x8xbf16>, vector<18x1x8xbf16> -> vector<18x18x8xbf16>
    %11 = vector.extract_strided_slice %10 {offsets = [0, 0, 0], sizes = [16, 16, 8], strides = [1, 1, 1]} : vector<18x18x8xbf16> to vector<16x16x8xbf16>
    %12 = vector.extract_strided_slice %10 {offsets = [0, 1, 0], sizes = [16, 16, 8], strides = [1, 1, 1]} : vector<18x18x8xbf16> to vector<16x16x8xbf16>
    %13 = vector.extract_strided_slice %10 {offsets = [0, 2, 0], sizes = [16, 16, 8], strides = [1, 1, 1]} : vector<18x18x8xbf16> to vector<16x16x8xbf16>
    %14 = vector.extract_strided_slice %10 {offsets = [1, 0, 0], sizes = [16, 16, 8], strides = [1, 1, 1]} : vector<18x18x8xbf16> to vector<16x16x8xbf16>
    %15 = vector.extract_strided_slice %10 {offsets = [1, 1, 0], sizes = [16, 16, 8], strides = [1, 1, 1]} : vector<18x18x8xbf16> to vector<16x16x8xbf16>
    %16 = vector.extract_strided_slice %10 {offsets = [1, 2, 0], sizes = [16, 16, 8], strides = [1, 1, 1]} : vector<18x18x8xbf16> to vector<16x16x8xbf16>
    %17 = vector.extract_strided_slice %10 {offsets = [2, 0, 0], sizes = [16, 16, 8], strides = [1, 1, 1]} : vector<18x18x8xbf16> to vector<16x16x8xbf16>
    %18 = vector.extract_strided_slice %10 {offsets = [2, 1, 0], sizes = [16, 16, 8], strides = [1, 1, 1]} : vector<18x18x8xbf16> to vector<16x16x8xbf16>
    %19 = vector.extract_strided_slice %10 {offsets = [2, 2, 0], sizes = [16, 16, 8], strides = [1, 1, 1]} : vector<18x18x8xbf16> to vector<16x16x8xbf16>
    %20 = tpu.concatenate %11, %12, %13, %14, %15, %16, %17, %18, %19 in 2 : vector<16x16x8xbf16>, vector<16x16x8xbf16>, vector<16x16x8xbf16>, vector<16x16x8xbf16>, vector<16x16x8xbf16>, vector<16x16x8xbf16>, vector<16x16x8xbf16>, vector<16x16x8xbf16>, vector<16x16x8xbf16> -> vector<16x16x72xbf16>
    %21 = vector.shape_cast %20 : vector<16x16x72xbf16> to vector<256x72xbf16>
    %c0_7 = arith.constant 0 : index
    %c0_8 = arith.constant 0 : index
    %22 = vector.load %arg3[%c0_7, %c0_8] : memref<72x4xbf16, #tpu.memory_space<vmem>>, vector<72x4xbf16>
    %cst = arith.constant dense<0.000000e+00> : vector<256x4xf32>
    %23 = tpu.matmul %21, %22, %cst {dimension_numbers = #tpu.dot_dimension_numbers<[1], [0], [0], [1], [0, 0, 1, 1], [], []>} : vector<256x72xbf16>, vector<72x4xbf16>, vector<256x4xf32> -> vector<256x4xf32>
    %c0_9 = arith.constant 0 : index
    %c0_10 = arith.constant 0 : index
    %24 = vector.load %arg4[%c0_9, %c0_10] : memref<1x4xf32, #tpu.memory_space<vmem>>, vector<1x4xf32>
    %25 = vector.broadcast %24 : vector<1x4xf32> to vector<256x4xf32>
    %26 = arith.addf %23, %25 : vector<256x4xf32>
    %cst_11 = arith.constant 0.000000e+00 : f32
    %27 = vector.broadcast %cst_11 : f32 to vector<256x4xf32>
    %28 = arith.cmpf oge, %26, %27 : vector<256x4xf32>
    %cst_12 = arith.constant 0.00999999977 : f32
    %29 = vector.broadcast %cst_12 : f32 to vector<256x4xf32>
    %30 = arith.mulf %29, %26 : vector<256x4xf32>
    %31 = arith.select %28, %26, %30 : vector<256x4xi1>, vector<256x4xf32>
    %32 = tpu.transpose %31, [1, 0] : vector<256x4xf32> -> vector<4x256xf32>
    %c0_13 = arith.constant 0 : index
    %c0_14 = arith.constant 0 : index
    %c0_15 = arith.constant 0 : index
    %33 = vector.load %arg5[%c0_13, %c0_14, %c0_15] : memref<1x4x256xf32, #tpu.memory_space<vmem>>, vector<1x4x256xf32>
    %34 = vector.shape_cast %33 : vector<1x4x256xf32> to vector<4x256xf32>
    %35 = vector.shape_cast %32 : vector<4x256xf32> to vector<1x4x256xf32>
    tpu.vector_store %arg5[%c0_13, %c0_14, %c0_15], %35 {strides = array<i32>} : memref<1x4x256xf32, #tpu.memory_space<vmem>>, vector<1x4x256xf32>,
    return
  }
  func.func @transform_0(%arg0: i32) -> (i32, i32, i32, i32) {
    %c0_i32 = arith.constant 0 : i32
    %c0_i32_0 = arith.constant 0 : i32
    %c0_i32_1 = arith.constant 0 : i32
    %c0_i32_2 = arith.constant 0 : i32
    return %arg0, %c0_i32, %c0_i32_0, %c0_i32_1 : i32, i32, i32, i32
  }
  func.func @transform_1(%arg0: i32) -> (i32, i32, i32, i32) {
    %c0_i32 = arith.constant 0 : i32
    %c0_i32_0 = arith.constant 0 : i32
    %c0_i32_1 = arith.constant 0 : i32
    %c0_i32_2 = arith.constant 0 : i32
    return %arg0, %c0_i32, %c0_i32_0, %c0_i32_1 : i32, i32, i32, i32
  }
  func.func @transform_2(%arg0: i32) -> (i32, i32) {
    %c0_i32 = arith.constant 0 : i32
    %c0_i32_0 = arith.constant 0 : i32
    %c0_i32_1 = arith.constant 0 : i32
    return %c0_i32, %c0_i32_0 : i32, i32
  }
  func.func @transform_3(%arg0: i32) -> (i32, i32) {
    %c0_i32 = arith.constant 0 : i32
    %c0_i32_0 = arith.constant 0 : i32
    %c0_i32_1 = arith.constant 0 : i32
    return %c0_i32, %c0_i32_0 : i32, i32
  }
  func.func @transform_4(%arg0: i32) -> (i32, i32, i32) {
    %c0_i32 = arith.constant 0 : i32
    %c0_i32_0 = arith.constant 0 : i32
    %c0_i32_1 = arith.constant 0 : i32
    return %arg0, %c0_i32, %c0_i32_0 : i32, i32, i32
  }
}

</mosaic_0001>

<bundles_post_ra>
// kernel: decoder_block_forward.1
= control target key start
LH: loop header
LB: loop body
LE: loop exit
PB: predicated region body
PF: predicated region fallthrough
CT: control target
= control target key end

     0   :  { %s2226_s15 = smov 0   ;;  %s3266_s0 = inlined_call_operand.vmem [shape: bf16[2,16,16,4], index: 0, kind: input, shape index: {}]   ;;  %s3267_s1 = inlined_call_operand.vmem [shape: bf16[2,16,16,4], index: 1, kind: input, shape index: {}]   ;;  %s3268_s2 = inlined_call_operand.vmem [shape: bf16[72,4], index: 2, kind: input, shape index: {}]   ;;  %s3269_s3 = inlined_call_operand.vmem [shape: f32[1,4], index: 3, kind: input, shape index: {}]   ;;  %s3270_s4 = inlined_call_operand.vmem [shape: f32[2,4,256], index: 4, kind: output, shape index: {}]  }
   0x1 LB: > { %s1985_s16 = sadd.s32 4294967295, %s2190_s15   ;;  %p1989_p0 = scmp.ge.s32.totalorder %s2190_s15, 1  ;;  %s2190_s15 = sphi %s2226_s15, %s14_s15  }
   0x2   : > { %p172_p1 = scmp.lt.s32.totalorder %s2190_s15, 3 }
   0x4   : > { %p173_p2 = pnand %p1989_p0, %p172_p1 }
   0x6   : > { %176 = sbr.rel (%p173_p2) target bundleno = 805 (0x325), region = 36 }
   0xd   : > { %p203_p3 = scmp.lt.s32.totalorder %s1985_s16, 1  ;;  %s2192_s21 = smov 4   ;;  %vm475_vm0 = vcmask 31744   ;;  %vm700_vm1 = vcmask 1040384   ;;  %vm701_vm2 = vsmask.f32 256 }
   0xe   : > { %vm2305_vm3 = vmand %vm700_vm1, %vm701_vm2  ;;  %s2193_s25 = smov 24   ;;  %s2194_s26 = smov 48   ;;  %vm976_vm4 = vcmask 1046528   ;;  %vm735_vm5 = vsmask.f32 7424  ;;  %vm1588_vm6 = vcmask 1043456  }
   0xf   : > { %s3298_s16 = smov (!%p203_p3, %s1985_s16), 1  ;;  %s2195_s27 = smov 16   ;;  %vm1255_vm7 = vcmask 64512   ;;  %vm1286_vm8 = vcmask 130048   ;;  %vm1317_vm9 = vcmask 195584   ;;  %vm1350_vm10 = vcmask 261120  }
  0x10   : > { %s2052_s17 = sshll.u32 %s3298_s16, 7  ;;  %s2196_s28 = smov 40   ;;  %vm1383_vm11 = vcmask 326656   ;;  %vm1416_vm12 = vcmask 392192   ;;  %vm1448_vm13 = vcmask 457728   ;;  %vm1480_vm14 = vcmask 523264  }
  0x11   : > { %s2240_s20 = scalar_lea.vmem %s3267_s1, %s2052_s17  ;;  %s2259_s24 = scalar_lea.vmem %s3266_s0, %s2052_s17  ;;  %vm1555_vm15 = vcmask 588800  }
  0x12   : > { %v2147_v0 = vld [vmem:[%s2240_s20 + $0x8] sm:$0xff]   ;;  %v2148_v1 = vld [vmem:[%s2240_s20] sm:$0xff]   ;;  %v2149_v2 = vld [vmem:[%s2240_s20 + $0x38] sm:$0xff]   ;;  %s2197_s29 = smov 64   ;;  %s2198_s10 = smov 8  }
  0x13   : > { %445 = vrot.lane.b32.xlu0 %v2147_v0, %s2192_s21  ;;  %443 = vrot.lane.b32.xlu1 %v2148_v1, %s2192_s21  ;;  %v2150_v3 = vld [vmem:[%s2240_s20 + $0x40] sm:$0xff]   ;;  %v2151_v4 = vld [vmem:[%s2240_s20 + $0x48] sm:$0xff]   ;;  %s2199_s17 = smov 32   ;;  %s2200_s18 = smov 56  }
  0x14   : > { %v2152_v5 = vld [vmem:[%s2240_s20 + $0x10] sm:$0xff]   ;;  %v2154_v7 = vld [vmem:[%s2240_s20 + $0x18] sm:$0xff]   ;;  %v2156_v9 = vld [vmem:[%s2240_s20 + $0x20] sm:$0xff]  }
  0x15   : > { %v2153_v6 = vld [vmem:[%s2240_s20 + $0x50] sm:$0xff]   ;;  %v2155_v8 = vld [vmem:[%s2240_s20 + $0x58] sm:$0xff]   ;;  %v2157_v10 = vld [vmem:[%s2240_s20 + $0x60] sm:$0xff]  }
  0x16   : > { %v2158_v11 = vld [vmem:[%s2240_s20 + $0x28] sm:$0xff]   ;;  %v2160_v13 = vld [vmem:[%s2240_s20 + $0x30] sm:$0xff]   ;;  %v2164_v15 = vld [vmem:[%s2240_s20 + $0x78] sm:$0xff]  }
  0x17   : > { %457 = vrot.lane.b32.xlu0 %v2149_v2, %s2192_s21  ;;  %459 = vrot.lane.b32.xlu1 %v2150_v3, %s2192_s21  ;;  %v2159_v12 = vld [vmem:[%s2240_s20 + $0x68] sm:$0xff]   ;;  %v2161_v14 = vld [vmem:[%s2240_s20 + $0x70] sm:$0xff]  }
  0x18   : > { %v2162_v16 = vld [vmem:[%s2259_s24 + $0x8] sm:$0xff]   ;;  %v2163_v17 = vld [vmem:[%s2259_s24] sm:$0xff]   ;;  %v2168_v33 = vld [vmem:[%s2259_s24 + $0x10] sm:$0xff]  }
  0x19   : > { %v2166_v23 = vld [vmem:[%s2259_s24 + $0x40] sm:$0xff]   ;;  %v2167_v30 = vld [vmem:[%s2259_s24 + $0x48] sm:$0xff]   ;;  %v2169_v44 = vld [vmem:[%s2259_s24 + $0x50] sm:$0xff]  }
  0x1a   : > { %v2170_v47 = vld [vmem:[%s2259_s24 + $0x18] sm:$0xff]  }
  0x1b   : > { %461 = vrot.lane.b32.xlu0 %v2151_v4, %s2192_s21  ;;  %447 = vrot.lane.b32.xlu1 %v2152_v5, %s2192_s21  ;;  %v2171_v62 = vld [vmem:[%s2259_s24 + $0x58] sm:$0xff]  }
  0x1c   : > { %v2165_v63 = vld [vmem:[%s2259_s24 + $0x38] sm:$0xff]  }
  0x1f   : > { %463 = vrot.lane.b32.xlu0 %v2153_v6, %s2192_s21  ;;  %449 = vrot.lane.b32.xlu1 %v2154_v7, %s2192_s21  ;;  %v2172_v7 = vld [vmem:[%s2259_s24 + $0x20] sm:$0xff]  }
  0x23   : > { %465 = vrot.lane.b32.xlu0 %v2155_v8, %s2192_s21  ;;  %451 = vrot.lane.b32.xlu1 %v2156_v9, %s2192_s21 }
  0x27   : > { %467 = vrot.lane.b32.xlu0 %v2157_v10, %s2192_s21  ;;  %453 = vrot.lane.b32.xlu1 %v2158_v11, %s2192_s21 }
  0x2b   : > { %469 = vrot.lane.b32.xlu0 %v2159_v12, %s2192_s21  ;;  %455 = vrot.lane.b32.xlu1 %v2160_v13, %s2192_s21 }
  0x2f   : > { %471 = vrot.lane.b32.xlu0 %v2161_v14, %s2192_s21  ;;  %473 = vrot.lane.b32.xlu1 %v2164_v15, %s2192_s21  ;;  %s2054_s21 = sshll.u32 %s3298_s16, 3 }
  0x85   : > { %v446_v18 = vpop.permute.xlu0 %445  ;;  %v444_v20 = vpop.permute.xlu1 %443 }
  0x86   : > { %v2282_v19 = vsel %vm475_vm0, %v2162_v16, %v446_v18  ;;  %v2286_v22 = vsel %vm475_vm0, %v2163_v17, %v444_v20  ;;  %v2173_v16 = vld [vmem:[%s2259_s24 + $0x60] sm:$0xff]  }
  0x87   : > { %v524_v21 = vshrl.u32 %v2282_v19, 16  ;;  %v526_v24 = vshrl.u32 %v2286_v22, 16  ;;  %v577_v28 = vshll.u32 %v2286_v22, 16  ;;  %v573_v31 = vshll.u32 %v2282_v19, 16  ;;  %v2174_v22 = vld [vmem:[%s2259_s24 + $0x28] sm:$0xff]  }
  0x89   : > { %v2290_v25 = vrot.slane %v524_v21, 7  ;;  %v458_v26 = vpop.permute.xlu0 %457  ;;  %v2292_v27 = vrot.slane %v526_v24, 7  ;;  %v460_v29 = vpop.permute.xlu1 %459 }
  0x8a   : > { %v2298_v32 = vsel %vm475_vm0, %v2166_v23, %v460_v29  ;;  %v499_v9 = vsel %vm475_vm0, %v2165_v63, %v458_v26 }
  0x8b   : > { %v579_v34 = vor.u32 %v577_v28, %v2292_v27  ;;  %v540_v35 = vshrl.u32 %v2298_v32, 16  ;;  %v575_v37 = vor.u32 %v573_v31, %v2290_v25  ;;  %v605_v40 = vshll.u32 %v2298_v32, 16 }
  0x8c   : > { %v538_v18 = vshrl.u32 %v499_v9, 16 }
  0x8d   : > { %v462_v38 = vpop.permute.xlu0 %461  ;;  %v2312_v39 = vrot.slane %v540_v35, 7  ;;  %v448_v42 = vpop.permute.xlu1 %447  ;;  %v2320_v43 = vsel %vm2305_vm3, %v526_v24, %v579_v34  ;;  %v2336_v50 = vsel %vm2305_vm3, %v524_v21, %v575_v37 }
  0x8e   : > { %v2316_v41 = vsel %vm475_vm0, %v2167_v30, %v462_v38  ;;  %v2325_v46 = vsel %vm475_vm0, %v2168_v33, %v448_v42  ;;  %1053 = vrot.lane.b32.xlu0 %v2320_v43, %s2193_s25  ;;  %v600_v30 = vrot.slane %v538_v18, 7  ;;  %v601_v42 = vshll.u32 %v499_v9, 16 }
  0x8f   : > { %v542_v45 = vshrl.u32 %v2316_v41, 16  ;;  %v607_v48 = vor.u32 %v605_v40, %v2312_v39  ;;  %v528_v49 = vshrl.u32 %v2325_v46, 16  ;;  %v609_v52 = vshll.u32 %v2316_v41, 16 }
  0x90   : > { %v581_v56 = vshll.u32 %v2325_v46, 16  ;;  %v675_v19 = vrot.slane %v601_v42, 7  ;;  %v977_v63 = vrot.slane %v2336_v50, 1  ;;  %v980_v46 = vrot.slane %v2320_v43, 1 }
  0x91   : > { %v2338_v51 = vrot.slane %v542_v45, 7  ;;  %v464_v53 = vpop.permute.xlu0 %463  ;;  %v2343_v54 = vsel %vm2305_vm3, %v540_v35, %v607_v48  ;;  %v2345_v55 = vrot.slane %v528_v49, 7  ;;  %v450_v58 = vpop.permute.xlu1 %449 }
  0x92   : > { %v2349_v57 = vsel %vm475_vm0, %v2169_v44, %v464_v53  ;;  %1069 = vrot.lane.b32.xlu1 %v2343_v54, %s2193_s25  ;;  %1055 = vrot.lane.b32.xlu0 %v2336_v50, %s2193_s25  ;;  %v2360_v61 = vsel %vm475_vm0, %v2170_v47, %v450_v58  ;;  %v668_v44 = vrot.slane %v573_v31, 7  ;;  %v669_v31 = vrot.slane %v577_v28, 7 }
  0x93   : > { %v611_v59 = vor.u32 %v609_v52, %v2338_v51  ;;  %v544_v60 = vshrl.u32 %v2349_v57, 16  ;;  %v583_v2 = vor.u32 %v581_v56, %v2345_v55  ;;  %v613_v4 = vshll.u32 %v2349_v57, 16 }
  0x94   : > { %v530_v5 = vshrl.u32 %v2360_v61, 16  ;;  %v585_v10 = vshll.u32 %v2360_v61, 16  ;;  %v676_v28 = vrot.slane %v605_v40, 7  ;;  %v670_v9 = vrot.slane %v581_v56, 7 }
  0x95   : > { %v2366_v0 = vsel %vm2305_vm3, %v542_v45, %v611_v59  ;;  %v466_v1 = vpop.permute.xlu0 %465  ;;  %v2371_v3 = vrot.slane %v544_v60, 7  ;;  %v452_v8 = vpop.permute.xlu1 %451  ;;  %v2387_v11 = vsel %vm2305_vm3, %v528_v49, %v583_v2  ;;  %v603_v45 = vor.u32 %v601_v42, %v600_v30 }
  0x96   : > { %1071 = vrot.lane.b32.xlu1 %v2366_v0, %s2193_s25  ;;  %1165 = vrot.lane.b32.xlu0 %v2336_v50, %s2194_s26  ;;  %v2380_v6 = vsel %vm475_vm0, %v2171_v62, %v466_v1  ;;  %v2392_v13 = vrot.slane %v530_v5, 7  ;;  %v2400_v15 = vsel %vm475_vm0, %v2172_v7, %v452_v8  ;;  %v2453_v59 = vsel %vm2305_vm3, %v2290_v25, %v668_v44  ;;  %v2175_v25 = vld [vmem:[%s2259_s24 + $0x68] sm:$0xff]  }
  0x97   : > { %v615_v12 = vor.u32 %v613_v4, %v2371_v3  ;;  %v546_v14 = vshrl.u32 %v2380_v6, 16  ;;  %v617_v20 = vshll.u32 %v2380_v6, 16  ;;  %v532_v26 = vshrl.u32 %v2400_v15, 16 }
  0x98   : > { %v587_v23 = vor.u32 %v585_v10, %v2392_v13  ;;  %v589_v33 = vshll.u32 %v2400_v15, 16  ;;  %v978_v1 = vrot.slane %v2453_v59, 1  ;;  %v2476_v2 = vsel %vm2305_vm3, %v600_v30, %v675_v19  ;;  %v2177_v30 = vld [vmem:[%s2259_s24 + $0x70] sm:$0xff]  }
  0x99   : > { %v468_v17 = vpop.permute.xlu0 %467  ;;  %v2406_v21 = vsel %vm2305_vm3, %v544_v60, %v615_v12  ;;  %v2409_v24 = vrot.slane %v546_v14, 7  ;;  %v2427_v37 = vrot.slane %v532_v26, 7  ;;  %v454_v58 = vpop.permute.xlu1 %453  ;;  %v2457_v60 = vsel %vm2305_vm3, %v538_v18, %v603_v45 }
  0x9a   : > { %1181 = vrot.lane.b32.xlu1 %v2366_v0, %s2194_s26  ;;  %1167 = vrot.lane.b32.xlu0 %v2387_v11, %s2194_s26  ;;  %v2417_v29 = vsel %vm475_vm0, %v2173_v16, %v468_v17  ;;  %v2422_v34 = vsel %vm2305_vm3, %v530_v5, %v587_v23  ;;  %v677_v8 = vrot.slane %v609_v52, 7  ;;  %v998_v12 = vrot.slane %v2457_v60, 1  ;;  %v2176_v52 = vld [vmem:[%s2259_s24 + $0x30] sm:$0xff]  }
  0x9b   : > { %3281 = vst [vmem:[#allocation2_spill] sm:$0xff] %v2422_v34  ;;  %v619_v35 = vor.u32 %v617_v20, %v2409_v24  ;;  %v548_v38 = vshrl.u32 %v2417_v29, 16  ;;  %v591_v48 = vor.u32 %v589_v33, %v2427_v37  ;;  %v621_v53 = vshll.u32 %v2417_v29, 16 }
  0x9c   : > { %v2486_v32 = vsel %vm2305_vm3, %v2292_v27, %v669_v31  ;;  %v678_v40 = vrot.slane %v613_v4, 7  ;;  %v2495_v41 = vsel %vm976_vm4, %v977_v63, %v978_v1  ;;  %v671_v56 = vrot.slane %v585_v10, 7 }
  0x9d   : > { %v2438_v47 = vsel %vm2305_vm3, %v546_v14, %v619_v35  ;;  %v2441_v49 = vrot.slane %v548_v38, 7  ;;  %v2461_v61 = vsel %vm2305_vm3, %v532_v26, %v591_v48  ;;  %v470_v5 = vpop.permute.xlu0 %469  ;;  %v456_v7 = vpop.permute.xlu1 %455  ;;  %v999_v27 = vrot.slane %v2476_v2, 1  ;;  %v2178_v35 = vld [vmem:[%s2259_s24 + $0x78] sm:$0xff]   ;;  %s217_s24 = scalar_lea.vmem %s3270_s4, %s2054_s21 }
  0x9e   : > { %1183 = vrot.lane.b32.xlu1 %v2406_v21, %s2194_s26  ;;  %1057 = vrot.lane.b32.xlu0 %v2387_v11, %s2193_s25  ;;  %3282 = vst [vmem:[#allocation3_spill] sm:$0xff] %v2438_v47  ;;  %3283 = vst [vmem:[#allocation4_spill] sm:$0xff] %v2461_v61  ;;  %v2505_v57 = vsel %vm475_vm0, %v2174_v22, %v454_v58  ;;  %v2508_v4 = vsel %vm475_vm0, %v2175_v25, %v470_v5  ;;  %v981_v15 = vrot.slane %v2486_v32, 1 }
  0x9f   : > { %v623_v62 = vor.u32 %v621_v53, %v2441_v49  ;;  %v2514_v10 = vsel %vm2305_vm3, %v2312_v39, %v676_v28  ;;  %v534_v16 = vshrl.u32 %v2505_v57, 16  ;;  %v593_v17 = vshll.u32 %v2505_v57, 16 }
  0xa0   : > { %v672_v18 = vrot.slane %v589_v33, 7  ;;  %v2519_v23 = vsel %vm976_vm4, %v998_v12, %v999_v27  ;;  %v550_v26 = vshrl.u32 %v2508_v4, 16  ;;  %v625_v29 = vshll.u32 %v2508_v4, 16 }
  0xa1   : > { %v2492_v14 = vsel %vm2305_vm3, %v548_v38, %v623_v62  ;;  %v982_v38 = vsel %vm976_vm4, %v980_v46, %v981_v15  ;;  %v1001_v42 = vrot.slane %v2343_v54, 1  ;;  %v2527_v39 = vrot.slane %v534_v16, 7  ;;  %v472_v45 = vpop.permute.xlu0 %471  ;;  %v474_v48 = vpop.permute.xlu1 %473 }
  0xa2   : > { %1073 = vrot.lane.b32.xlu1 %v2406_v21, %s2193_s25  ;;  %1059 = vrot.lane.b32.xlu0 %v2422_v34, %s2193_s25  ;;  %3284 = vst [vmem:[#allocation5_spill] sm:$0xff] %v2492_v14  ;;  %v496_v44 = vsel %vm475_vm0, %v2176_v52, %v456_v7  ;;  %v680_v33 = vrot.slane %v621_v53, 7  ;;  %v1002_v58 = vrot.slane %v2514_v10, 1  ;;  %v2534_v19 = vrot.slane %v550_v26, 7 }
  0xa3   : > { %v536_v31 = vshrl.u32 %v496_v44, 16  ;;  %v2539_v62 = vsel %vm2305_vm3, %v2338_v51, %v677_v8  ;;  %v1004_v63 = vrot.slane %v2366_v0, 1  ;;  %v595_v22 = vor.u32 %v593_v17, %v2527_v39 }
  0xa4   : > { %v597_v53 = vshll.u32 %v496_v44, 16  ;;  %v627_v25 = vor.u32 %v625_v29, %v2534_v19  ;;  %v520_v1 = vsel %vm475_vm0, %v2177_v30, %v472_v45  ;;  %v2548_v5 = vsel %vm475_vm0, %v2178_v35, %v474_v48 }
  0xa5   : > { %v596_v28 = vrot.slane %v536_v31, 7  ;;  %v2551_v7 = vsel %vm976_vm4, %v1001_v42, %v1002_v58  ;;  %v2556_v51 = vsel %vm2305_vm3, %v2371_v3, %v678_v40  ;;  %v2560_v8 = vsel %vm2305_vm3, %v534_v16, %v595_v22 }
  0xa6   : > { %1075 = vrot.lane.b32.xlu1 %v2438_v47, %s2193_s25  ;;  %1169 = vrot.lane.b32.xlu0 %v2422_v34, %s2194_s26  ;;  %3285 = vst [vmem:[#allocation6_spill] sm:$0xff] %v2551_v7  ;;  %3286 = vst [vmem:[#allocation7_spill] sm:$0xff] %v2560_v8  ;;  %v674_v12 = vrot.slane %v597_v53, 7  ;;  %v2567_v46 = vsel %vm2305_vm3, %v550_v26, %v627_v25  ;;  %v552_v27 = vshrl.u32 %v520_v1, 16  ;;  %v629_v57 = vshll.u32 %v520_v1, 16 }
  0xa7   : > { %3287 = vst [vmem:[#allocation8_spill] sm:$0xff] %v2567_v46  ;;  %v599_v52 = vor.u32 %v597_v53, %v596_v28  ;;  %v1007_v3 = vrot.slane %v2406_v21, 1  ;;  %v3271_v15 = vshrl.u32 %v2548_v5, 16  ;;  %v633_v16 = vshll.u32 %v2548_v5, 16 }
  0xa8   : > { %v2572_v40 = vsel %vm2305_vm3, %v596_v28, %v674_v12  ;;  %v2579_v30 = vsel %vm2305_vm3, %v2345_v55, %v670_v9  ;;  %v628_v35 = vrot.slane %v552_v27, 7  ;;  %v1008_v42 = vrot.slane %v2556_v51, 1 }
  0xa9   : > { %v2583_v26 = vsel %vm2305_vm3, %v536_v31, %v599_v52  ;;  %v2589_v44 = vsel %vm2305_vm3, %v2392_v13, %v671_v56  ;;  %v632_v45 = vrot.slane %v3271_v15, 7  ;;  %v683_v48 = vrot.slane %v633_v16, 7 }
  0xaa   : > { %1185 = vrot.lane.b32.xlu1 %v2438_v47, %s2194_s26  ;;  %1171 = vrot.lane.b32.xlu0 %v2461_v61, %s2194_s26  ;;  %v679_v55 = vrot.slane %v617_v20, 7  ;;  %v631_v9 = vor.u32 %v629_v57, %v628_v35  ;;  %v2606_v13 = vsel %vm2305_vm3, %v2427_v37, %v672_v18  ;;  %v1005_v56 = vrot.slane %v2539_v62, 1 }
  0xab   : > { %v983_v6 = vrot.slane %v2387_v11, 1  ;;  %v984_v20 = vrot.slane %v2579_v30, 1  ;;  %v2613_v31 = vsel %vm2305_vm3, %v632_v45, %v683_v48  ;;  %v986_v22 = vrot.slane %v2422_v34, 1 }
  0xac   : > { %v987_v53 = vrot.slane %v2589_v44, 1  ;;  %v673_v25 = vrot.slane %v593_v17, 7  ;;  %v2619_v28 = vsel %vm2305_vm3, %v552_v27, %v631_v9  ;;  %v2622_v37 = vsel %vm976_vm4, %v1004_v63, %v1005_v56 }
  0xad   : > { %v2625_v18 = vsel %vm976_vm4, %v1007_v3, %v1008_v42  ;;  %v739_v1 = vshll.u32 %v2336_v50, 16  ;;  %v2631_v12 = vsel %vm2305_vm3, %v2441_v49, %v680_v33  ;;  %v737_v17 = vshrl.u32 %v2336_v50, 16 }
  0xae   : > { %1187 = vrot.lane.b32.xlu1 %v2492_v14, %s2194_s26  ;;  %1022 = vrot.lane.b32.xlu0 %v2495_v41, %s2195_s27  ;;  %v751_v63 = vshll.u32 %v2320_v43, 16  ;;  %v681_v52 = vrot.slane %v625_v29, 7  ;;  %v989_v27 = vrot.slane %v2461_v61, 1  ;;  %v985_v49 = vsel %vm976_vm4, %v983_v6, %v984_v20 }
  0xaf   : > { %v1013_v3 = vrot.slane %v2492_v14, 1  ;;  %v1014_v4 = vrot.slane %v2631_v12, 1  ;;  %v724_v29 = vsel %vm2305_vm3, %v2527_v39, %v673_v25  ;;  %v797_v48 = vshrl.u32 %v2560_v8, 16 }
  0xb0   : > { %v799_v9 = vshll.u32 %v2560_v8, 16  ;;  %v804_v39 = vshll.u32 %v724_v29, 16  ;;  %v732_v56 = vsel %vm2305_vm3, %v2534_v19, %v681_v52  ;;  %v635_v6 = vor.u32 %v633_v16, %v632_v45 }
  0xb1   : > { %v809_v45 = vshrl.u32 %v2583_v26, 16  ;;  %v811_v52 = vshll.u32 %v2583_v26, 16  ;;  %v823_v15 = vshll.u32 %v2457_v60, 16  ;;  %v1093_v36 = vshll.u32 %v2613_v31, 16 }
  0xb2   : > { %1036 = vrot.lane.b32.xlu1 %v2519_v23, %s2195_s27  ;;  %1024 = vrot.lane.b32.xlu0 %v982_v38, %s2195_s27  ;;  %v801_v20 = vrot.slane %v799_v9, 1  ;;  %v806_v25 = vrot.slane %v804_v39, 1 }
  0xb6   : > { %1038 = vrot.lane.b32.xlu1 %v2551_v7, %s2195_s27  ;;  %1133 = vrot.lane.b32.xlu0 %v982_v38, %s2196_s28  ;;  %v682_v38 = vrot.slane %v629_v57, 7  ;;  %v990_v57 = vrot.slane %v2606_v13, 1 }
  0xb8   : > { %v2601_v58 = vsel %vm2305_vm3, %v628_v35, %v682_v38  ;;  %v2652_v35 = vsel %vm2305_vm3, %v2409_v24, %v679_v55  ;;  %v741_v38 = vrot.slane %v739_v1, 1  ;;  %v2659_v42 = vsel %vm976_vm4, %v989_v27, %v990_v57 }
  0xb9   : > { %v2667_v24 = vrot.slane %v751_v63, 1  ;;  %v2670_v55 = vsel %vm976_vm4, %v1013_v3, %v1014_v4  ;;  %v900_v1 = vshll.u32 %v732_v56, 16  ;;  %v992_v27 = vrot.slane %v2560_v8, 1 }
  0xba   : > { %1149 = vrot.lane.b32.xlu1 %v2551_v7, %s2196_s28  ;;  %1135 = vrot.lane.b32.xlu0 %v2495_v41, %s2196_s28  ;;  %v993_v63 = vrot.slane %v724_v29, 1  ;;  %v802_v57 = vor.u32 %v801_v20, %v797_v48  ;;  %v1016_v3 = vrot.slane %v2567_v46, 1  ;;  %v1017_v4 = vrot.slane %v732_v56, 1  ;;  %v2179_v29 = vld [vmem:[%s3268_s2] sm:$0xff]  }
  0xbb   : > { %v902_v19 = vrot.slane %v900_v1, 1  ;;  %v816_v56 = vshll.u32 %v2572_v40, 16  ;;  %v813_v20 = vrot.slane %v811_v52, 1  ;;  %v907_v1 = vshll.u32 %v2619_v28, 16  ;;  %2076 = vmatprep.subr.bf16.mxu0 %v2179_v29  ;;  %2118 = vmatprep.subr.bf16.mxu1 %v2179_v29 }
  0xbc   : > { %v2682_v16 = vsel %vm976_vm4, %v992_v27, %v993_v63  ;;  %v2690_v48 = vsel %vm735_vm5, %v802_v57, %v806_v25  ;;  %v2693_v39 = vsel %vm976_vm4, %v1016_v3, %v1017_v4  ;;  %v912_v27 = vshll.u32 %v2601_v58, 16  ;;  %2077 = vmatpush3.bf16.msra.mxu0 %v2179_v29  ;;  %2123 = vmatpush3.bf16.msra.mxu1 %v2179_v29 }
  0xbd   : > { %v742_v63 = vor.u32 %v741_v38, %v737_v17  ;;  %v909_v57 = vrot.slane %v907_v1, 1  ;;  %v995_v4 = vrot.slane %v2583_v26, 1  ;;  %v2180_v17 = vld [vmem:[%s3268_s2 + $0x8] sm:$0xff]   ;;  %v996_v38 = vrot.slane %v2572_v40, 1 }
  0xbe   : > { %1151 = vrot.lane.b32.xlu1 %v2622_v37, %s2196_s28  ;;  %1225 = vrot.lane.b32.xlu0 %v2495_v41, %s2197_s29  ;;  %v2647_v41 = vsel %vm976_vm4, %v986_v22, %v987_v53  ;;  %v893_v22 = vshrl.u32 %v2567_v46, 16  ;;  %v895_v53 = vshll.u32 %v2567_v46, 16  ;;  %v914_v3 = vrot.slane %v912_v27, 1  ;;  %v2181_v27 = vld [vmem:[%s3268_s2 + $0x10] sm:$0xff]  }
  0xbf   : > { %v1020_v52 = vrot.slane %v2601_v58, 1  ;;  %v3288_v29 = vshrl.u32 %v2548_v5, 16  ;;  %2078 = vmatprep.subr.bf16.mxu0 %v2180_v17  ;;  %2119 = vmatprep.subr.bf16.mxu1 %v2180_v17 }
  0xc0   : > { %v897_v33 = vrot.slane %v895_v53, 1  ;;  %v905_v53 = vshrl.u32 %v2619_v28, 16  ;;  %2079 = vmatpush3.bf16.msra.mxu0 %v2180_v17  ;;  %2124 = vmatpush3.bf16.msra.mxu1 %v2180_v17  ;;  %v1010_v17 = vrot.slane %v2438_v47, 1 }
  0xc1   : > { %2080 = vmatprep.subr.bf16.mxu0 %v2181_v27  ;;  %2120 = vmatprep.subr.bf16.mxu1 %v2181_v27 }
  0xc2   : > { %1241 = vrot.lane.b32.xlu1 %v2622_v37, %s2197_s29  ;;  %1243 = vrot.lane.b32.xlu0 %v2625_v18, %s2197_s29  ;;  %v898_v9 = vor.u32 %v897_v33, %v893_v22  ;;  %v818_v33 = vrot.slane %v816_v56, 1  ;;  %v814_v22 = vor.u32 %v813_v20, %v809_v45  ;;  %v910_v45 = vor.u32 %v909_v57, %v905_v53 }
  0xc3   : > { %v2725_v56 = vsel %vm976_vm4, %v995_v4, %v996_v38  ;;  %v749_v53 = vshrl.u32 %v2320_v43, 16  ;;  %v1095_v57 = vrot.slane %v1093_v36, 1  ;;  %v1131_v4 = vrot.slane %v2613_v31, 1 }
  0xc4   : > { %v2701_v25 = vsel %vm735_vm5, %v898_v9, %v902_v19  ;;  %v1019_v19 = vrot.slane %v2619_v28, 1  ;;  %v2740_v1 = vsel %vm735_vm5, %v910_v45, %v914_v3  ;;  %2081 = vmatpush3.bf16.msra.mxu0 %v2181_v27  ;;  %2125 = vmatpush3.bf16.msra.mxu1 %v2181_v27 }
  0xc5   : > { %v754_v38 = vor.u32 %v2667_v24, %v749_v53  ;;  %v821_v24 = vshrl.u32 %v2457_v60, 16 }
  0xc6   : > { %1227 = vrot.lane.b32.xlu1 %v985_v49, %s2197_s29  ;;  %1026 = vrot.lane.b32.xlu0 %v985_v49, %s2195_s27  ;;  %v2728_v5 = vsel %vm976_vm4, %v1019_v19, %v1020_v52  ;;  %v825_v19 = vrot.slane %v823_v15, 1  ;;  %v835_v52 = vshll.u32 %v2343_v54, 16  ;;  %v2182_v15 = vld [vmem:[%s3268_s2 + $0x18] sm:$0xff]  }
  0xc7   : > { %2082 = vmatprep.subr.bf16.mxu0 %v2182_v15  ;;  %2121 = vmatprep.subr.bf16.mxu1 %v2182_v15 }
  0xc8   : > { %v837_v36 = vrot.slane %v835_v52, 1  ;;  %2083 = vmatpush3.bf16.msra.mxu0 %v2182_v15  ;;  %2126 = vmatpush3.bf16.msra.mxu1 %v2182_v15  ;;  %v845_v52 = vshrl.u32 %v2366_v0, 16 }
  0xca   : > { %1040 = vrot.lane.b32.xlu1 %v2622_v37, %s2195_s27  ;;  %1137 = vrot.lane.b32.xlu0 %v985_v49, %s2196_s28  ;;  %v2717_v37 = vsel %vm2305_vm3, %v3288_v29, %v635_v6  ;;  %v2720_v49 = vsel %vm735_vm5, %v814_v22, %v818_v33  ;;  %v3289_v6 = vshll.u32 %v2453_v59, 16  ;;  %v756_v33 = vshll.u32 %v2486_v32, 16 }
  0xcb   : > { %v1086_v9 = vshrl.u32 %v2717_v37, 16  ;;  %v1088_v40 = vshll.u32 %v2717_v37, 16  ;;  %v1130_v58 = vrot.slane %v2717_v37, 1  ;;  %v1011_v59 = vrot.slane %v2652_v35, 1 }
  0xcc   : > { %v746_v20 = vrot.slane %v3289_v6, 1  ;;  %v758_v31 = vrot.slane %v756_v33, 1  ;;  %v833_v6 = vshrl.u32 %v2343_v54, 16 }
  0xcd   : > { %v1090_v22 = vrot.slane %v1088_v40, 1  ;;  %v2753_v29 = vsel %vm976_vm4, %v1130_v58, %v1131_v4  ;;  %v826_v40 = vor.u32 %v825_v19, %v821_v24  ;;  %v761_v4 = vshrl.u32 %v2387_v11, 16 }
  0xce   : > { %1042 = vrot.lane.b32.xlu1 %v2625_v18, %s2195_s27  ;;  %1139 = vrot.lane.b32.xlu0 %v2647_v41, %s2196_s28  ;;  %v747_v3 = vsel %vm735_vm5, %v742_v63, %v746_v20  ;;  %v828_v63 = vshll.u32 %v2476_v2, 16  ;;  %v2183_v2 = vld [vmem:[%s3268_s2 + $0x20] ss:$0 sps:$4 sm:$0xff]   ;;  %v840_v20 = vshll.u32 %v2514_v10, 16  ;;  %v838_v33 = vor.u32 %v837_v36, %v833_v6 }
  0xcf   : > { %v1091_v32 = vor.u32 %v1090_v22, %v1086_v9  ;;  %v2767_v9 = vsel %vm976_vm4, %v1010_v17, %v1011_v59  ;;  %2128 = vmatprep.subr.msk.bf16.mxu0 %vm1588_vm6, %v2183_v2  ;;  %v1590_v53 = vsel %vm1588_vm6, %v2183_v2, 0  ;;  %2129 = vmatprep.subr.msk.bf16.mxu1 %vm1588_vm6, %v2183_v2  ;;  %v847_v22 = vshll.u32 %v2366_v0, 16 }
  0xd0   : > { %v830_v58 = vrot.slane %v828_v63, 1  ;;  %2085 = vmatpush3.bf16.msra.mxu0 %v1590_v53  ;;  %2127 = vmatpush3.bf16.msra.mxu1 %v1590_v53  ;;  %v842_v10 = vrot.slane %v840_v20, 1  ;;  %v768_v19 = vshll.u32 %v2579_v30, 16  ;;  %v859_v63 = vshll.u32 %v2406_v21, 16 }
  0xd1   : > { %v2764_v45 = vsel %vm735_vm5, %v1091_v32, %v1095_v57  ;;  %v763_v57 = vshll.u32 %v2387_v11, 16  ;;  %v849_v59 = vrot.slane %v847_v22, 1  ;;  %v852_v32 = vshll.u32 %v2539_v62, 16 }
  0xd2   : > { %1153 = vrot.lane.b32.xlu1 %v2625_v18, %s2196_s28  ;;  %916 = vrot.lane.b32.xlu0 %v747_v3, %s2198_s10  ;;  %v759_v18 = vsel %vm735_vm5, %v754_v38, %v758_v31  ;;  %v2779_v27 = vsel %vm735_vm5, %v826_v40, %v830_v58  ;;  %v2788_v17 = vsel %vm735_vm5, %v838_v33, %v842_v10  ;;  %v770_v24 = vrot.slane %v768_v19, 1 }
  0xd3   : > { %v765_v38 = vrot.slane %v763_v57, 1  ;;  %v850_v15 = vor.u32 %v849_v59, %v845_v52  ;;  %v854_v30 = vrot.slane %v852_v32, 1  ;;  %v861_v36 = vrot.slane %v859_v63, 1 }
  0xd4   : > { %v864_v2 = vshll.u32 %v2556_v51, 16  ;;  %v857_v62 = vshrl.u32 %v2406_v21, 16  ;;  %v775_v58 = vshll.u32 %v2422_v34, 16  ;;  %v780_v33 = vshll.u32 %v2589_v44, 16 }
  0xd5   : > { %v766_v31 = vor.u32 %v765_v38, %v761_v4  ;;  %v871_v22 = vshll.u32 %v2438_v47, 16  ;;  %v869_v4 = vshrl.u32 %v2438_v47, 16  ;;  %v876_v38 = vshll.u32 %v2652_v35, 16 }
  0xd6   : > { %1155 = vrot.lane.b32.xlu1 %v2767_v9, %s2196_s28  ;;  %918 = vrot.lane.b32.xlu0 %v759_v18, %s2198_s10  ;;  %v862_v6 = vor.u32 %v861_v36, %v857_v62  ;;  %v866_v20 = vrot.slane %v864_v2, 1  ;;  %v777_v53 = vrot.slane %v775_v58, 1  ;;  %v782_v10 = vrot.slane %v780_v33, 1 }
  0xd7   : > { %v771_v40 = vsel %vm735_vm5, %v766_v31, %v770_v24  ;;  %v873_v59 = vrot.slane %v871_v22, 1  ;;  %v787_v19 = vshll.u32 %v2461_v61, 16  ;;  %v785_v52 = vshrl.u32 %v2461_v61, 16 }
  0xd8   : > { %v867_v51 = vsel %vm735_vm5, %v862_v6, %v866_v20  ;;  %v792_v32 = vshll.u32 %v2606_v13, 16  ;;  %v878_v31 = vrot.slane %v876_v38, 1  ;;  %v883_v63 = vshll.u32 %v2492_v14, 16 }
  0xd9   : > { %v789_v24 = vrot.slane %v787_v19, 1  ;;  %v888_v2 = vshll.u32 %v2631_v12, 16 }
  0xda   : > { %930 = vrot.lane.b32.xlu1 %v2779_v27, %s2198_s10  ;;  %1097 = vrot.lane.b32.xlu0 %v759_v18, %s2199_s17  ;;  %v855_v18 = vsel %vm735_vm5, %v850_v15, %v854_v30  ;;  %v874_v15 = vor.u32 %v873_v59, %v869_v4  ;;  %v794_v35 = vrot.slane %v792_v32, 1  ;;  %v881_v30 = vshrl.u32 %v2492_v14, 16 }
  0xdb   : > { %v885_v36 = vrot.slane %v883_v63, 1  ;;  %v890_v58 = vrot.slane %v888_v2, 1 }
  0xdd   : > { %v886_v62 = vor.u32 %v885_v36, %v881_v30 }
  0xde   : > { %932 = vrot.lane.b32.xlu1 %v2788_v17, %s2198_s10  ;;  %1099 = vrot.lane.b32.xlu0 %v747_v3, %s2199_s17 }
  0xdf   : > { %v891_v20 = vsel %vm735_vm5, %v886_v62, %v890_v58 }
  0xe2   : > { %1113 = vrot.lane.b32.xlu1 %v2788_v17, %s2199_s17  ;;  %1195 = vrot.lane.b32.xlu0 %v747_v3, %s2200_s18  ;;  %v773_v3 = vshrl.u32 %v2422_v34, 16 }
  0xe4   : > { %v778_v57 = vor.u32 %v777_v53, %v773_v3 }
  0xe6   : > { %1115 = vrot.lane.b32.xlu1 %v855_v18, %s2199_s17  ;;  %1197 = vrot.lane.b32.xlu0 %v771_v40, %s2200_s18  ;;  %v783_v44 = vsel %vm735_vm5, %v778_v57, %v782_v10 }
  0xea   : > { %1211 = vrot.lane.b32.xlu1 %v855_v18, %s2200_s18  ;;  %934 = vrot.lane.b32.xlu0 %v855_v18, %s2198_s10  ;;  %v879_v18 = vsel %vm735_vm5, %v874_v15, %v878_v31 }
  0xee   : > { %1213 = vrot.lane.b32.xlu1 %v867_v51, %s2200_s18  ;;  %936 = vrot.lane.b32.xlu0 %v867_v51, %s2198_s10 }
  0xf2   : > { %920 = vrot.lane.b32.xlu1 %v771_v40, %s2198_s10  ;;  %1101 = vrot.lane.b32.xlu0 %v771_v40, %s2199_s17  ;;  %v790_v40 = vor.u32 %v789_v24, %v785_v52 }
  0xf4   : > { %v795_v13 = vsel %vm735_vm5, %v790_v40, %v794_v35 }
  0xf6   : > { %1117 = vrot.lane.b32.xlu1 %v867_v51, %s2199_s17  ;;  %1103 = vrot.lane.b32.xlu0 %v783_v44, %s2199_s17 }
  0xfa   : > { %1119 = vrot.lane.b32.xlu1 %v879_v18, %s2199_s17  ;;  %1199 = vrot.lane.b32.xlu0 %v783_v44, %s2200_s18 }
  0xfe   : > { %1215 = vrot.lane.b32.xlu1 %v879_v18, %s2200_s18  ;;  %1201 = vrot.lane.b32.xlu0 %v795_v13, %s2200_s18 }
 0x100   : > { %v2834_v6 = vpop.permute.xlu0 %1053 }
 0x102   : > { %1217 = vrot.lane.b32.xlu1 %v891_v20, %s2200_s18  ;;  %1229 = vrot.lane.b32.xlu0 %v2647_v41, %s2197_s29 }
 0x104   : > { %v2840_v12 = vpop.permute.xlu1 %1069  ;;  %v2842_v3 = vpop.permute.xlu0 %1055 }
 0x106   : > { %1245 = vrot.lane.b32.xlu1 %v2767_v9, %s2197_s29  ;;  %922 = vrot.lane.b32.xlu0 %v783_v44, %s2198_s10 }
 0x108   : > { %v2847_v53 = vpop.permute.xlu1 %1071  ;;  %v2849_v33 = vpop.permute.xlu0 %1165 }
 0x10a   : > { %938 = vrot.lane.b32.xlu1 %v879_v18, %s2198_s10  ;;  %1231 = vrot.lane.b32.xlu0 %v2659_v42, %s2197_s29 }
 0x10c   : > { %v2854_v51 = vpop.permute.xlu1 %1181  ;;  %v2856_v22 = vpop.permute.xlu0 %1167 }
 0x10e   : > { %1247 = vrot.lane.b32.xlu1 %v2670_v55, %s2197_s29  ;;  %924 = vrot.lane.b32.xlu0 %v795_v13, %s2198_s10 }
 0x110   : > { %v2861_v57 = vpop.permute.xlu1 %1183  ;;  %v2863_v10 = vpop.permute.xlu0 %1057 }
 0x112   : > { %940 = vrot.lane.b32.xlu1 %v891_v20, %s2198_s10  ;;  %1028 = vrot.lane.b32.xlu0 %v2647_v41, %s2195_s27 }
 0x114   : > { %v2868_v4 = vpop.permute.xlu1 %1073  ;;  %v2870_v59 = vpop.permute.xlu0 %1059 }
 0x116   : > { %1044 = vrot.lane.b32.xlu1 %v2767_v9, %s2195_s27  ;;  %1030 = vrot.lane.b32.xlu0 %v2659_v42, %s2195_s27 }
 0x118   : > { %v2876_v38 = vpop.permute.xlu1 %1075  ;;  %v2878_v19 = vpop.permute.xlu0 %1169 }
 0x11a   : > { %1046 = vrot.lane.b32.xlu1 %v2670_v55, %s2195_s27  ;;  %1061 = vrot.lane.b32.xlu0 %v2461_v61, %s2193_s25 }
 0x11c   : > { %v2884_v41 = vpop.permute.xlu1 %1185  ;;  %v2886_v44 = vpop.permute.xlu0 %1171 }
 0x11e   : > { %1077 = vrot.lane.b32.xlu1 %v2492_v14, %s2193_s25  ;;  %1063 = vrot.lane.b32.xlu0 %v2560_v8, %s2193_s25 }
 0x120   : > { %v2892_v9 = vpop.permute.xlu1 %1187  ;;  %v1023_v52 = vpop.permute.xlu0 %1022 }
 0x122   : > { %1079 = vrot.lane.b32.xlu1 %v2567_v46, %s2193_s25  ;;  %1105 = vrot.lane.b32.xlu0 %v795_v13, %s2199_s17 }
 0x124   : > { %v1037_v32 = vpop.permute.xlu1 %1036  ;;  %v1025_v15 = vpop.permute.xlu0 %1024 }
 0x126   : > { %1121 = vrot.lane.b32.xlu1 %v891_v20, %s2199_s17  ;;  %1107 = vrot.lane.b32.xlu0 %v2690_v48, %s2199_s17 }
 0x128   : > { %v2900_v31 = vpop.permute.xlu1 %1038  ;;  %v1134_v24 = vpop.permute.xlu0 %1133 }
 0x12a   : > { %1123 = vrot.lane.b32.xlu1 %v2701_v25, %s2199_s17  ;;  %1141 = vrot.lane.b32.xlu0 %v2659_v42, %s2196_s28 }
 0x12c   : > { %v2906_v63 = vpop.permute.xlu1 %1149  ;;  %v2908_v35 = vpop.permute.xlu0 %1135 }
 0x12e   : > { %1157 = vrot.lane.b32.xlu1 %v2670_v55, %s2196_s28  ;;  %1143 = vrot.lane.b32.xlu0 %v2682_v16, %s2196_s28 }
 0x130   : > { %v2914_v30 = vpop.permute.xlu1 %1151  ;;  %v2916_v18 = vpop.permute.xlu0 %1225 }
 0x132   : > { %1159 = vrot.lane.b32.xlu1 %v2693_v39, %s2196_s28  ;;  %1173 = vrot.lane.b32.xlu0 %v2560_v8, %s2194_s26 }
 0x134   : > { %v2922_v42 = vpop.permute.xlu1 %1241  ;;  %v2924_v40 = vpop.permute.xlu0 %1243 }
 0x136   : > { %1189 = vrot.lane.b32.xlu1 %v2567_v46, %s2194_s26  ;;  %1175 = vrot.lane.b32.xlu0 %v2583_v26, %s2194_s26 }
 0x138   : > { %v2930_v55 = vpop.permute.xlu1 %1227  ;;  %v2932_v36 = vpop.permute.xlu0 %1026 }
 0x13a   : > { %1191 = vrot.lane.b32.xlu1 %v2619_v28, %s2194_s26  ;;  %1203 = vrot.lane.b32.xlu0 %v2690_v48, %s2200_s18 }
 0x13c   : > { %v2938_v2 = vpop.permute.xlu1 %1040  ;;  %v2940_v13 = vpop.permute.xlu0 %1137 }
 0x13e   : > { %1219 = vrot.lane.b32.xlu1 %v2701_v25, %s2200_s18  ;;  %1205 = vrot.lane.b32.xlu0 %v2720_v49, %s2200_s18 }
 0x140   : > { %v2946_v62 = vpop.permute.xlu1 %1042  ;;  %v2948_v58 = vpop.permute.xlu0 %1139 }
 0x142   : > { %1221 = vrot.lane.b32.xlu1 %v2740_v1, %s2200_s18  ;;  %1233 = vrot.lane.b32.xlu0 %v2682_v16, %s2197_s29 }
 0x144   : > { %v2954_v20 = vpop.permute.xlu1 %1153  ;;  %v917_v46 = vpop.permute.xlu0 %916 }
 0x145   : > { %v1257_v8 = vsel %vm1255_vm7, %v2336_v50, %v917_v46 }
 0x146   : > { %1249 = vrot.lane.b32.xlu1 %v2693_v39, %s2197_s29  ;;  %926 = vrot.lane.b32.xlu0 %v2690_v48, %s2198_s10  ;;  %v2965_v47 = vsel %vm1286_vm8, %v1257_v8, %v1023_v52 }
 0x147   : > { %v1319_v50 = vsel %vm1317_vm9, %v2965_v47, %v2834_v6 }
 0x148   : > { %v2962_v14 = vpop.permute.xlu1 %1155  ;;  %v919_v61 = vpop.permute.xlu0 %918 }
 0x149   : > { %v1259_v48 = vsel %vm1255_vm7, %v2320_v43, %v919_v61 }
 0x14a   : > { %942 = vrot.lane.b32.xlu1 %v2701_v25, %s2198_s10  ;;  %1235 = vrot.lane.b32.xlu0 %v2725_v56, %s2197_s29  ;;  %v1290_v8 = vsel %vm1286_vm8, %v1259_v48, %v1025_v15 }
 0x14b   : > { %v1321_v6 = vsel %vm1317_vm9, %v1290_v8, %v2842_v3 }
 0x14c   : > { %v931_v34 = vpop.permute.xlu1 %930  ;;  %v1098_v7 = vpop.permute.xlu0 %1097 }
 0x14d   : > { %v1352_v46 = vsel %vm1350_vm10, %v1319_v50, %v1098_v7  ;;  %v1271_v43 = vsel %vm1255_vm7, %v2457_v60, %v931_v34 }
 0x14e   : > { %1251 = vrot.lane.b32.xlu1 %v2728_v5, %s2197_s29  ;;  %928 = vrot.lane.b32.xlu0 %v2720_v49, %s2198_s10  ;;  %v1385_v52 = vsel %vm1383_vm11, %v1352_v46, %v1134_v24  ;;  %v1302_v15 = vsel %vm1286_vm8, %v1271_v43, %v1037_v32 }
 0x14f   : > { %v1418_v3 = vsel %vm1416_vm12, %v1385_v52, %v2849_v33  ;;  %v1335_v50 = vsel %vm1317_vm9, %v1302_v15, %v2840_v12 }
 0x150   : > { %v933_v61 = vpop.permute.xlu1 %932  ;;  %v1100_v25 = vpop.permute.xlu0 %1099 }
 0x151   : > { %v1354_v7 = vsel %vm1350_vm10, %v1321_v6, %v1100_v25  ;;  %v1273_v34 = vsel %vm1255_vm7, %v2343_v54, %v933_v61 }
 0x152   : > { %944 = vrot.lane.b32.xlu1 %v2740_v1, %s2198_s10  ;;  %1032 = vrot.lane.b32.xlu0 %v2682_v16, %s2195_s27  ;;  %v1387_v32 = vsel %vm1383_vm11, %v1354_v7, %v2908_v35  ;;  %v1304_v16 = vsel %vm1286_vm8, %v1273_v34, %v2900_v31 }
 0x153   : > { %v1420_v12 = vsel %vm1416_vm12, %v1387_v32, %v2856_v22  ;;  %v1337_v61 = vsel %vm1317_vm9, %v1304_v16, %v2847_v53 }
 0x154   : > { %v1114_v24 = vpop.permute.xlu1 %1113  ;;  %v1196_v48 = vpop.permute.xlu0 %1195 }
 0x155   : > { %v1450_v8 = vsel %vm1448_vm13, %v1418_v3, %v1196_v48  ;;  %v1368_v46 = vsel %vm1350_vm10, %v1335_v50, %v1114_v24 }
 0x156   : > { %1048 = vrot.lane.b32.xlu1 %v2693_v39, %s2195_s27  ;;  %1034 = vrot.lane.b32.xlu0 %v2725_v56, %s2195_s27  ;;  %v1482_v33 = vsel %vm1480_vm14, %v1450_v8, %v2916_v18  ;;  %v1401_v31 = vsel %vm1383_vm11, %v1368_v46, %v2906_v63 }
 0x157   : > { %2086 = vmatprep.mubr.msk.bf16.mxu0 %vm1555_vm15, %v1482_v33  ;;  %v1434_v63 = vsel %vm1416_vm12, %v1401_v31, %v2854_v51 }
 0x158   : > { %v1116_v35 = vpop.permute.xlu1 %1115  ;;  %v1198_v43 = vpop.permute.xlu0 %1197 }
 0x159   : > { %v1452_v39 = vsel %vm1448_vm13, %v1420_v12, %v1198_v43  ;;  %v1370_v25 = vsel %vm1350_vm10, %v1337_v61, %v1116_v35 }
 0x15a   : > { %1050 = vrot.lane.b32.xlu1 %v2728_v5, %s2195_s27  ;;  %1065 = vrot.lane.b32.xlu0 %v2583_v26, %s2193_s25  ;;  %v1484_v22 = vsel %vm1480_vm14, %v1452_v39, %v2930_v55  ;;  %v1403_v52 = vsel %vm1383_vm11, %v1370_v25, %v2914_v30 }
 0x15b   : > { %2087 = vmatmul.mubr.msk.bf16.vlgmr.msra.gmra.mrb[0].mxu0 %vm1555_vm15, %v1484_v22  ;;  %v1436_v51 = vsel %vm1416_vm12, %v1403_v52, %v2861_v57  ;;  %v3290_v22 = vld [vmem:[#allocation6_spill] sm:$0xff] }
 0x15c   : > { %v1212_v18 = vpop.permute.xlu1 %1211  ;;  %v935_v53 = vpop.permute.xlu0 %934 }
 0x15d   : > { %v1466_v6 = vsel %vm1448_vm13, %v1434_v63, %v1212_v18  ;;  %v1275_v48 = vsel %vm1255_vm7, %v2366_v0, %v935_v53 }
 0x15e   : > { %1081 = vrot.lane.b32.xlu1 %v2619_v28, %s2193_s25  ;;  %1067 = vrot.lane.b32.xlu0 %v2457_v60, %s2193_s25  ;;  %v1498_v55 = vsel %vm1480_vm14, %v1466_v6, %v2922_v42  ;;  %v1306_v50 = vsel %vm1286_vm8, %v1275_v48, %v2938_v2 }
 0x15f   : > { %2102 = vmatprep.mubr.msk.bf16.mxu1 %vm1555_vm15, %v1498_v55 }
 0x160   : > { %v1214_v15 = vpop.permute.xlu1 %1213  ;;  %v937_v7 = vpop.permute.xlu0 %936 }
 0x161   : > { %v1468_v30 = vsel %vm1448_vm13, %v1436_v51, %v1214_v15  ;;  %v1277_v16 = vsel %vm1255_vm7, %v2406_v21, %v937_v7 }
 0x162   : > { %1083 = vrot.lane.b32.xlu1 %v2717_v37, %s2193_s25  ;;  %1109 = vrot.lane.b32.xlu0 %v2720_v49, %s2199_s17  ;;  %v1500_v34 = vsel %vm1480_vm14, %v1468_v30, %v2924_v40  ;;  %v1308_v21 = vsel %vm1286_vm8, %v1277_v16, %v2946_v62 }
 0x163   : > { %2103 = vmatmul.mubr.msk.bf16.vlgmr.msra.gmra.mrb[0].mxu1 %vm1555_vm15, %v1500_v34  ;;  %v1341_v62 = vsel %vm1317_vm9, %v1308_v21, %v2876_v38 }
 0x164   : > { %v921_v42 = vpop.permute.xlu1 %920  ;;  %v1102_v24 = vpop.permute.xlu0 %1101 }
 0x165   : > { %v1261_v49 = vsel %vm1255_vm7, %v2387_v11, %v921_v42 }
 0x166   : > { %1125 = vrot.lane.b32.xlu1 %v2740_v1, %s2199_s17  ;;  %1111 = vrot.lane.b32.xlu0 %v2779_v27, %s2199_s17  ;;  %v1323_v1 = vsel %vm1317_vm9, %v2965_v47, %v2863_v10  ;;  %v1292_v11 = vsel %vm1286_vm8, %v1261_v49, %v2932_v36  ;;  %v1339_v47 = vsel %vm1317_vm9, %v1306_v50, %v2868_v4 }
 0x167   : > { %v1356_v0 = vsel %vm1350_vm10, %v1323_v1, %v1102_v24 }
 0x168   : > { %v1118_v57 = vpop.permute.xlu1 %1117  ;;  %v1104_v3 = vpop.permute.xlu0 %1103 }
 0x169   : > { %v1372_v2 = vsel %vm1350_vm10, %v1339_v47, %v1118_v57 }
 0x16a   : > { %1127 = vrot.lane.b32.xlu1 %v2764_v45, %s2199_s17  ;;  %1145 = vrot.lane.b32.xlu0 %v2725_v56, %s2196_s28  ;;  %v1389_v56 = vsel %vm1383_vm11, %v1356_v0, %v2940_v13  ;;  %v1405_v4 = vsel %vm1383_vm11, %v1372_v2, %v2954_v20 }
 0x16b   : > { %v1422_v36 = vsel %vm1416_vm12, %v1389_v56, %v2878_v19 }
 0x16c   : > { %v1120_v40 = vpop.permute.xlu1 %1119  ;;  %v1200_v32 = vpop.permute.xlu0 %1199 }
 0x16d   : > { %v1454_v13 = vsel %vm1448_vm13, %v1422_v36, %v1200_v32 }
 0x16e   : > { %1161 = vrot.lane.b32.xlu1 %v2728_v5, %s2196_s28  ;;  %1147 = vrot.lane.b32.xlu0 %v2519_v23, %s2196_s28  ;;  %v1325_v5 = vsel %vm1317_vm9, %v1292_v11, %v2870_v59 }
 0x16f   : > { %v1358_v59 = vsel %vm1350_vm10, %v1325_v5, %v1104_v3 }
 0x170   : > { %v1216_v10 = vpop.permute.xlu1 %1215  ;;  %v1202_v8 = vpop.permute.xlu0 %1201  ;;  %v1391_v19 = vsel %vm1383_vm11, %v1358_v59, %v2948_v58  ;;  %v3293_v59 = vld [vmem:[#allocation4_spill] sm:$0xff] }
 0x172   : > { %1163 = vrot.lane.b32.xlu1 %v2753_v29, %s2196_s28  ;;  %1177 = vrot.lane.b32.xlu0 %v2457_v60, %s2194_s26  ;;  %v1438_v60 = vsel %vm1416_vm12, %v1405_v4, %v2884_v41 }
 0x173   : > { %v1470_v20 = vsel %vm1448_vm13, %v1438_v60, %v1216_v10  ;;  %v3292_v10 = vld [vmem:[#allocation3_spill] sm:$0xff] }
 0x174   : > { %v1218_v46 = vpop.permute.xlu1 %1217  ;;  %v1230_v33 = vpop.permute.xlu0 %1229 }
 0x175   : > { %v1486_v35 = vsel %vm1480_vm14, %v1454_v13, %v1230_v33 }
 0x176   : > { %1193 = vrot.lane.b32.xlu1 %v2717_v37, %s2194_s26  ;;  %1179 = vrot.lane.b32.xlu0 %v2343_v54, %s2194_s26  ;;  %v1374_v37 = vsel %vm1350_vm10, %v1341_v62, %v1120_v40  ;;  %v1424_v54 = vsel %vm1416_vm12, %v1391_v19, %v2886_v44  ;;  %v3291_v40 = vld [vmem:[#allocation2_spill] sm:$0xff] }
 0x177   : > { %2090 = vmatprep.mubr.msk.bf16.mxu0 %vm1555_vm15, %v1486_v35  ;;  %v1407_v38 = vsel %vm1383_vm11, %v1374_v37, %v2962_v14  ;;  %v1456_v41 = vsel %vm1448_vm13, %v1424_v54, %v1202_v8 }
 0x178   : > { %v1246_v12 = vpop.permute.xlu1 %1245  ;;  %v923_v43 = vpop.permute.xlu0 %922 }
 0x179   : > { %v1502_v31 = vsel %vm1480_vm14, %v1470_v20, %v1246_v12  ;;  %v1263_v32 = vsel %vm1255_vm7, %v3291_v40, %v923_v43 }
 0x17a   : > { %1207 = vrot.lane.b32.xlu1 %v2779_v27, %s2200_s18  ;;  %1223 = vrot.lane.b32.xlu0 %v2764_v45, %s2200_s18  ;;  %v1440_v45 = vsel %vm1416_vm12, %v1407_v38, %v2892_v9  ;;  %v3294_v38 = vld [vmem:[#allocation5_spill] sm:$0xff] }
 0x17b   : > { %2106 = vmatprep.mubr.msk.bf16.mxu1 %vm1555_vm15, %v1502_v31  ;;  %v1472_v27 = vsel %vm1448_vm13, %v1440_v45, %v1218_v46 }
 0x17c   : > { %v939_v58 = vpop.permute.xlu1 %938  ;;  %v1232_v61 = vpop.permute.xlu0 %1231 }
 0x17d   : > { %v1488_v39 = vsel %vm1480_vm14, %v1456_v41, %v1232_v61  ;;  %v1279_v8 = vsel %vm1255_vm7, %v3292_v10, %v939_v58 }
 0x17e   : > { %1209 = vrot.lane.b32.xlu1 %v2788_v17, %s2200_s18  ;;  %1237 = vrot.lane.b32.xlu0 %v2519_v23, %s2197_s29 }
 0x17f   : > { %2091 = vmatmul.mubr.msk.bf16.gmra.mrb[4].mxu0 %vm1555_vm15, %v1488_v39 }
 0x180   : > { %v1248_v14 = vpop.permute.xlu1 %1247  ;;  %v925_v44 = vpop.permute.xlu0 %924 }
 0x181   : > { %v1504_v25 = vsel %vm1480_vm14, %v1472_v27, %v1248_v14  ;;  %v1265_v35 = vsel %vm1255_vm7, %v3293_v59, %v925_v44 }
 0x182   : > { %1253 = vrot.lane.b32.xlu1 %v2753_v29, %s2197_s29  ;;  %1239 = vrot.lane.b32.xlu0 %v3290_v22, %s2197_s29 }
 0x183   : > { %2107 = vmatmul.mubr.msk.bf16.gmra.mrb[4].mxu1 %vm1555_vm15, %v1504_v25 }
 0x184   : > { %v941_v23 = vpop.permute.xlu1 %940  ;;  %v1029_v17 = vpop.permute.xlu0 %1028 }
 0x185   : > { %v1294_v50 = vsel %vm1286_vm8, %v1263_v32, %v1029_v17  ;;  %v1281_v41 = vsel %vm1255_vm7, %v3294_v38, %v941_v23 }
 0x188   : > { %v1045_v63 = vpop.permute.xlu1 %1044  ;;  %v1031_v9 = vpop.permute.xlu0 %1030 }
 0x189   : > { %v1310_v16 = vsel %vm1286_vm8, %v1279_v8, %v1045_v63  ;;  %v1296_v19 = vsel %vm1286_vm8, %v1265_v35, %v1031_v9  ;;  %v3296_v35 = vld [vmem:[#allocation8_spill] sm:$0xff] }
 0x18c   : > { %v1047_v18 = vpop.permute.xlu1 %1046  ;;  %v1062_v53 = vpop.permute.xlu0 %1061 }
 0x18d   : > { %v1327_v0 = vsel %vm1317_vm9, %v1294_v50, %v1062_v53  ;;  %v1312_v61 = vsel %vm1286_vm8, %v1281_v41, %v1047_v18 }
 0x190   : > { %v1078_v52 = vpop.permute.xlu1 %1077  ;;  %v1064_v6 = vpop.permute.xlu0 %1063 }
 0x191   : > { %v1343_v36 = vsel %vm1317_vm9, %v1310_v16, %v1078_v52  ;;  %v1329_v20 = vsel %vm1317_vm9, %v1296_v19, %v1064_v6 }
 0x194   : > { %v1080_v55 = vpop.permute.xlu1 %1079  ;;  %v1106_v51 = vpop.permute.xlu0 %1105 }
 0x195   : > { %v1360_v47 = vsel %vm1350_vm10, %v1327_v0, %v1106_v51  ;;  %v1345_v45 = vsel %vm1317_vm9, %v1312_v61, %v1080_v55 }
 0x198   : > { %v1122_v15 = vpop.permute.xlu1 %1121  ;;  %v1108_v7 = vpop.permute.xlu0 %1107 }
 0x199   : > { %v1376_v33 = vsel %vm1350_vm10, %v1343_v36, %v1122_v15  ;;  %v1362_v31 = vsel %vm1350_vm10, %v1329_v20, %v1108_v7  ;;  %v3295_v36 = vld [vmem:[#allocation7_spill] sm:$0xff] }
 0x19c   : > { %v1124_v30 = vpop.permute.xlu1 %1123  ;;  %v1142_v34 = vpop.permute.xlu0 %1141 }
 0x19d   : > { %v1393_v2 = vsel %vm1383_vm11, %v1360_v47, %v1142_v34  ;;  %v1378_v25 = vsel %vm1350_vm10, %v1345_v45, %v1124_v30 }
 0x1a0   : > { %v1158_v29 = vpop.permute.xlu1 %1157  ;;  %v1144_v42 = vpop.permute.xlu0 %1143 }
 0x1a1   : > { %v1409_v60 = vsel %vm1383_vm11, %v1376_v33, %v1158_v29  ;;  %v1395_v58 = vsel %vm1383_vm11, %v1362_v31, %v1144_v42 }
 0x1a4   : > { %v1160_v24 = vpop.permute.xlu1 %1159  ;;  %v1174_v57 = vpop.permute.xlu0 %1173 }
 0x1a5   : > { %v1426_v5 = vsel %vm1416_vm12, %v1393_v2, %v1174_v57  ;;  %v1411_v23 = vsel %vm1383_vm11, %v1378_v25, %v1160_v24 }
 0x1a8   : > { %v1190_v3 = vpop.permute.xlu1 %1189  ;;  %v1176_v48 = vpop.permute.xlu0 %1175 }
 0x1a9   : > { %v1442_v62 = vsel %vm1416_vm12, %v1409_v60, %v1190_v3  ;;  %v1428_v39 = vsel %vm1416_vm12, %v1395_v58, %v1176_v48 }
 0x1ac   : > { %v3134_v49 = vpop.permute.xlu1 %1191  ;;  %v1204_v1 = vpop.permute.xlu0 %1203 }
 0x1ad   : > { %v1458_v4 = vsel %vm1448_vm13, %v1426_v5, %v1204_v1  ;;  %v1444_v17 = vsel %vm1416_vm12, %v1411_v23, %v3134_v49 }
 0x1b0   : > { %v1220_v11 = vpop.permute.xlu1 %1219  ;;  %v1206_v56 = vpop.permute.xlu0 %1205 }
 0x1b1   : > { %v1474_v12 = vsel %vm1448_vm13, %v1442_v62, %v1220_v11  ;;  %v1460_v27 = vsel %vm1448_vm13, %v1428_v39, %v1206_v56 }
 0x1b4   : > { %v1222_v13 = vpop.permute.xlu1 %1221  ;;  %v1234_v46 = vpop.permute.xlu0 %1233 }
 0x1b5   : > { %v1490_v21 = vsel %vm1480_vm14, %v1458_v4, %v1234_v46  ;;  %v1476_v63 = vsel %vm1448_vm13, %v1444_v17, %v1222_v13 }
 0x1b6   : > { %2094 = vmatprep.mubr.msk.bf16.mxu0 %vm1555_vm15, %v1490_v21 }
 0x1b8   : > { %v1250_v43 = vpop.permute.xlu1 %1249  ;;  %v927_v37 = vpop.permute.xlu0 %926 }
 0x1b9   : > { %v1506_v54 = vsel %vm1480_vm14, %v1474_v12, %v1250_v43 }
 0x1ba   : > { %2110 = vmatprep.mubr.msk.bf16.mxu1 %vm1555_vm15, %v1506_v54 }
 0x1bc   : > { %v943_v14 = vpop.permute.xlu1 %942  ;;  %v1236_v44 = vpop.permute.xlu0 %1235 }
 0x1bd   : > { %v1492_v22 = vsel %vm1480_vm14, %v1460_v27, %v1236_v44  ;;  %v1283_v60 = vsel %vm1255_vm7, %v3296_v35, %v943_v14 }
 0x1be   : > { %2095 = vmatmul.mubr.msk.bf16.gmra.mrb[8].mxu0 %vm1555_vm15, %v1492_v22 }
 0x1c0   : > { %v3175_v9 = vpop.permute.xlu1 %1251  ;;  %v929_v18 = vpop.permute.xlu0 %928 }
 0x1c1   : > { %v1508_v53 = vsel %vm1480_vm14, %v1476_v63, %v3175_v9  ;;  %v3225_v63 = vld [vmem:[%s3269_s3] ss:$0 sm:$0xff] }
 0x1c2   : > { %2111 = vmatmul.mubr.msk.bf16.gmra.mrb[8].mxu1 %vm1555_vm15, %v1508_v53 }
 0x1c4   : > { %v945_v52 = vpop.permute.xlu1 %944  ;;  %v1033_v6 = vpop.permute.xlu0 %1032 }
 0x1c5   : > { %v1285_v32 = vsel %vm1255_vm7, %v2619_v28, %v945_v52  ;;  %v1267_v28 = vsel %vm1255_vm7, %v3295_v36, %v927_v37 }
 0x1c6   : > { %v1298_v4 = vsel %vm1286_vm8, %v1267_v28, %v1033_v6 }
 0x1c8   : > { %v1049_v55 = vpop.permute.xlu1 %1048  ;;  %v1035_v51 = vpop.permute.xlu0 %1034 }
 0x1c9   : > { %v1314_v19 = vsel %vm1286_vm8, %v1283_v60, %v1049_v55 }
 0x1cc   : > { %v1051_v15 = vpop.permute.xlu1 %1050  ;;  %v1066_v7 = vpop.permute.xlu0 %1065 }
 0x1cd   : > { %v1316_v50 = vsel %vm1286_vm8, %v1285_v32, %v1051_v15  ;;  %v1331_v46 = vsel %vm1317_vm9, %v1298_v4, %v1066_v7 }
 0x1d0   : > { %v1082_v30 = vpop.permute.xlu1 %1081  ;;  %v1068_v34 = vpop.permute.xlu0 %1067 }
 0x1d1   : > { %v1347_v12 = vsel %vm1317_vm9, %v1314_v19, %v1082_v30 }
 0x1d4   : > { %v1084_v29 = vpop.permute.xlu1 %1083  ;;  %v1110_v42 = vpop.permute.xlu0 %1109 }
 0x1d5   : > { %v1349_v0 = vsel %vm1317_vm9, %v1316_v50, %v1084_v29  ;;  %v1364_v59 = vsel %vm1350_vm10, %v1331_v46, %v1110_v42 }
 0x1d8   : > { %v1126_v24 = vpop.permute.xlu1 %1125  ;;  %v1112_v57 = vpop.permute.xlu0 %1111 }
 0x1d9   : > { %v1380_v38 = vsel %vm1350_vm10, %v1347_v12, %v1126_v24 }
 0x1dc   : > { %v1128_v3 = vpop.permute.xlu1 %1127  ;;  %v1146_v48 = vpop.permute.xlu0 %1145 }
 0x1dd   : > { %v1382_v11 = vsel %vm1350_vm10, %v1349_v0, %v1128_v3 }
 0x1e0   : > { %v1162_v1 = vpop.permute.xlu1 %1161  ;;  %v1148_v40 = vpop.permute.xlu0 %1147 }
 0x1e1   : > { %v1413_v58 = vsel %vm1383_vm11, %v1380_v38, %v1162_v1 }
 0x1e4   : > { %v1164_v56 = vpop.permute.xlu1 %1163  ;;  %v1178_v47 = vpop.permute.xlu0 %1177 }
 0x1e5   : > { %v1415_v10 = vsel %vm1383_vm11, %v1382_v11, %v1164_v56 }
 0x1e6   : > { %v1447_v8 = vsel %vm1416_vm12, %v1415_v10, %v3134_v49  ;;  %v1269_v49 = vsel %vm1255_vm7, %v2583_v26, %v929_v18 }
 0x1e7   : > { %v1479_v2 = vsel %vm1448_vm13, %v1447_v8, %v1222_v13  ;;  %v1397_v13 = vsel %vm1383_vm11, %v1364_v59, %v1146_v48  ;;  %v1300_v62 = vsel %vm1286_vm8, %v1269_v49, %v1035_v51 }
 0x1e8   : > { %v1194_v16 = vpop.permute.xlu1 %1193  ;;  %v1180_v5 = vpop.permute.xlu0 %1179  ;;  %v1430_v20 = vsel %vm1416_vm12, %v1397_v13, %v1178_v47  ;;  %v1333_v43 = vsel %vm1317_vm9, %v1300_v62, %v1068_v34  ;;  %v1511_v17 = vsel %vm1480_vm14, %v1479_v2, %v3175_v9 }
 0x1e9   : > { %v1366_v26 = vsel %vm1350_vm10, %v1333_v43, %v1112_v57  ;;  %v1446_v39 = vsel %vm1416_vm12, %v1413_v58, %v1194_v16 }
 0x1ea   : > { %v1399_v61 = vsel %vm1383_vm11, %v1366_v26, %v1148_v40 }
 0x1eb   : > { %v1432_v45 = vsel %vm1416_vm12, %v1399_v61, %v1180_v5 }
 0x1ec   : > { %v1208_v33 = vpop.permute.xlu1 %1207  ;;  %v1224_v21 = vpop.permute.xlu0 %1223 }
 0x1ed   : > { %v1462_v37 = vsel %vm1448_vm13, %v1430_v20, %v1208_v33  ;;  %v1478_v27 = vsel %vm1448_vm13, %v1446_v39, %v1224_v21 }
 0x1f0   : > { %v1210_v31 = vpop.permute.xlu1 %1209  ;;  %v1238_v54 = vpop.permute.xlu0 %1237 }
 0x1f1   : > { %v1494_v41 = vsel %vm1480_vm14, %v1462_v37, %v1238_v54  ;;  %v1464_v14 = vsel %vm1448_vm13, %v1432_v45, %v1210_v31 }
 0x1f2   : > { %2098 = vmatprep.mubr.msk.bf16.mxu0 %vm1555_vm15, %v1494_v41 }
 0x1f4   : > { %v1254_v44 = vpop.permute.xlu1 %1253  ;;  %v1240_v25 = vpop.permute.xlu0 %1239 }
 0x1f5   : > { %v1510_v22 = vsel %vm1480_vm14, %v1478_v27, %v1254_v44  ;;  %v1496_v23 = vsel %vm1480_vm14, %v1464_v14, %v1240_v25 }
 0x1f6   : > { %2099 = vmatmul.mubr.msk.bf16.gmra.mrb[12].mxu0 %vm1555_vm15, %v1496_v23  ;;  %2114 = vmatprep.mubr.msk.bf16.mxu1 %vm1555_vm15, %v1510_v22 }
 0x1f7   : > { %2115 = vmatmul.mubr.msk.bf16.gmra.mrb[12].mxu1 %vm1555_vm15, %v1511_v17 }
 0x22e   : > { %v2088_v18 = vpop.f32.mrb[0].mxu0 }
 0x22f   : > { %v1626_v53 = vpop.f32.mrb[1].mxu0  ;;  %v1635_v7 = vadd.f32 %v2088_v18, %v3225_v63 }
 0x230   : > { %v1627_v52 = vadd.f32 %v3225_v63, %v1626_v53  ;;  %v2089_v6 = vpop.f32.mrb[2].mxu0 }
 0x231   : > { %v1629_v55 = vpop.f32.mrb[3].mxu0  ;;  %v1638_v29 = vadd.f32 %v2089_v6, %v3225_v63  ;;  %v1787_v24 = vmul.f32 0.01, %v1635_v7  ;;  %vm1755_vm2 = vcmp.ge.f32.partialorder %v1635_v7, 0.0 }
 0x232   : > { %v1785_v51 = vmul.f32 0.01, %v1627_v52  ;;  %v1630_v15 = vadd.f32 %v3225_v63, %v1629_v55  ;;  %vm1753_vm0 = vcmp.ge.f32.partialorder %v1627_v52, 0.0 }
 0x233   : > { %v1788_v50 = vmul.f32 0.01, %v1638_v29  ;;  %v1819_v47 = vsel %vm1755_vm2, %v1635_v7, %v1787_v24  ;;  %vm1756_vm5 = vcmp.ge.f32.partialorder %v1638_v29, 0.0 }
 0x234   : > { %v1786_v9 = vmul.f32 0.01, %v1630_v15  ;;  %v1817_v30 = vsel %vm1753_vm0, %v1627_v52, %v1785_v51  ;;  %vm1754_vm1 = vcmp.ge.f32.partialorder %v1630_v15, 0.0 }
 0x235   : > { %1849 = vxpose.xlu1.b32.start [1/16] (narrow) %v1817_v30, 8  ;;  %v1820_v16 = vsel %vm1756_vm5, %v1638_v29, %v1788_v50 }
 0x236   : > { %v2104_v34 = vpop.f32.mrb[0].mxu1  ;;  %v1818_v48 = vsel %vm1754_vm1, %v1630_v15, %v1786_v9 }
 0x237   : > { %v1690_v42 = vpop.f32.mrb[1].mxu1  ;;  %v1699_v0 = vadd.f32 %v2104_v34, %v3225_v63 }
 0x238   : > { %v1691_v57 = vadd.f32 %v3225_v63, %v1690_v42  ;;  %v2105_v3 = vpop.f32.mrb[2].mxu1 }
 0x239   : > { %v1693_v1 = vpop.f32.mrb[3].mxu1  ;;  %1850 = vxpose.xlu1.b32.cont [2/16] (narrow) %v1818_v48, 8  ;;  %v1803_v10 = vmul.f32 0.01, %v1699_v0  ;;  %v1702_v8 = vadd.f32 %v2105_v3, %v3225_v63  ;;  %vm1771_vm6 = vcmp.ge.f32.partialorder %v1699_v0, 0.0 }
 0x23a   : > { %v1801_v40 = vmul.f32 0.01, %v1691_v57  ;;  %v1694_v32 = vadd.f32 %v3225_v63, %v1693_v1  ;;  %vm1769_vm3 = vcmp.ge.f32.partialorder %v1691_v57, 0.0 }
 0x23b   : > { %v1804_v5 = vmul.f32 0.01, %v1702_v8  ;;  %v1835_v36 = vsel %vm1771_vm6, %v1699_v0, %v1803_v10  ;;  %vm1772_vm7 = vcmp.ge.f32.partialorder %v1702_v8, 0.0 }
 0x23c   : > { %v1802_v11 = vmul.f32 0.01, %v1694_v32  ;;  %v1833_v56 = vsel %vm1769_vm3, %v1691_v57, %v1801_v40  ;;  %vm1770_vm4 = vcmp.ge.f32.partialorder %v1694_v32, 0.0 }
 0x23d   : > { %1881 = vxpose.xlu0.b32.start [1/16] (narrow) %v1833_v56, 8  ;;  %1851 = vxpose.xlu1.b32.cont [3/16] (narrow) %v1819_v47, 8  ;;  %v1836_v28 = vsel %vm1772_vm7, %v1702_v8, %v1804_v5 }
 0x23e   : > { %v1834_v2 = vsel %vm1770_vm4, %v1694_v32, %v1802_v11 }
 0x241   : > { %1882 = vxpose.xlu0.b32.cont [2/16] (narrow) %v1834_v2, 8  ;;  %1852 = vxpose.xlu1.b32.cont [4/16] (narrow) %v1820_v16, 8 }
 0x245   : > { %1883 = vxpose.xlu0.b32.cont [3/16] (narrow) %v1835_v36, 8 }
 0x249   : > { %1884 = vxpose.xlu0.b32.cont [4/16] (narrow) %v1836_v28, 8 }
 0x252   : > { %v2092_v4 = vpop.f32.mrb[4].mxu0 }
 0x253   : > { %v1642_v46 = vpop.f32.mrb[5].mxu0  ;;  %v1651_v13 = vadd.f32 %v2092_v4, %v3225_v63 }
 0x254   : > { %v1643_v33 = vadd.f32 %v3225_v63, %v1642_v46  ;;  %v2093_v21 = vpop.f32.mrb[6].mxu0 }
 0x255   : > { %v1645_v59 = vpop.f32.mrb[7].mxu0  ;;  %v1791_v38 = vmul.f32 0.01, %v1651_v13  ;;  %v1654_v26 = vadd.f32 %v2093_v21, %v3225_v63  ;;  %vm1759_vm12 = vcmp.ge.f32.partialorder %v1651_v13, 0.0 }
 0x256   : > { %v1789_v35 = vmul.f32 0.01, %v1643_v33  ;;  %v1646_v60 = vadd.f32 %v3225_v63, %v1645_v59  ;;  %v2108_v49 = vpop.f32.mrb[4].mxu1  ;;  %vm1757_vm8 = vcmp.ge.f32.partialorder %v1643_v33, 0.0 }
 0x257   : > { %v1706_v19 = vpop.f32.mrb[5].mxu1  ;;  %v1715_v41 = vadd.f32 %v2108_v49, %v3225_v63  ;;  %v1792_v45 = vmul.f32 0.01, %v1654_v26  ;;  %v1823_v25 = vsel %vm1759_vm12, %v1651_v13, %v1791_v38  ;;  %vm1760_vm14 = vcmp.ge.f32.partialorder %v1654_v26, 0.0 }
 0x258   : > { %v1790_v62 = vmul.f32 0.01, %v1646_v60  ;;  %v1707_v20 = vadd.f32 %v3225_v63, %v1706_v19  ;;  %v2109_v12 = vpop.f32.mrb[6].mxu1  ;;  %v1821_v43 = vsel %vm1757_vm8, %v1643_v33, %v1789_v35  ;;  %vm1758_vm9 = vcmp.ge.f32.partialorder %v1646_v60, 0.0 }
 0x259   : > { %v1709_v37 = vpop.f32.mrb[7].mxu1  ;;  %1853 = vxpose.xlu1.b32.cont [5/16] (narrow) %v1821_v43, 8  ;;  %v1807_v27 = vmul.f32 0.01, %v1715_v41  ;;  %v1718_v14 = vadd.f32 %v2109_v12, %v3225_v63  ;;  %vm1775_vm13 = vcmp.ge.f32.partialorder %v1715_v41, 0.0  ;;  %v1824_v17 = vsel %vm1760_vm14, %v1654_v26, %v1792_v45 }
 0x25a   : > { %v1805_v31 = vmul.f32 0.01, %v1707_v20  ;;  %v1710_v54 = vadd.f32 %v3225_v63, %v1709_v37  ;;  %vm1773_vm10 = vcmp.ge.f32.partialorder %v1707_v20, 0.0  ;;  %v1822_v39 = vsel %vm1758_vm9, %v1646_v60, %v1790_v62 }
 0x25b   : > { %v1808_v22 = vmul.f32 0.01, %v1718_v14  ;;  %v1839_v23 = vsel %vm1775_vm13, %v1715_v41, %v1807_v27  ;;  %vm1776_vm15 = vcmp.ge.f32.partialorder %v1718_v14, 0.0 }
 0x25c   : > { %v1806_v58 = vmul.f32 0.01, %v1710_v54  ;;  %v1837_v61 = vsel %vm1773_vm10, %v1707_v20, %v1805_v31  ;;  %vm1774_vm11 = vcmp.ge.f32.partialorder %v1710_v54, 0.0 }
 0x25d   : > { %1885 = vxpose.xlu0.b32.cont [5/16] (narrow) %v1837_v61, 8  ;;  %1854 = vxpose.xlu1.b32.cont [6/16] (narrow) %v1822_v39, 8  ;;  %v1840_v18 = vsel %vm1776_vm15, %v1718_v14, %v1808_v22 }
 0x25e   : > { %v1838_v44 = vsel %vm1774_vm11, %v1710_v54, %v1806_v58 }
 0x261   : > { %1886 = vxpose.xlu0.b32.cont [6/16] (narrow) %v1838_v44, 8  ;;  %1855 = vxpose.xlu1.b32.cont [7/16] (narrow) %v1823_v25, 8 }
 0x265   : > { %1887 = vxpose.xlu0.b32.cont [7/16] (narrow) %v1839_v23, 8  ;;  %1856 = vxpose.xlu1.b32.cont [8/16] (narrow) %v1824_v17, 8 }
 0x269   : > { %1888 = vxpose.xlu0.b32.cont [8/16] (narrow) %v1840_v18, 8 }
 0x291   : > { %v2096_v53 = vpop.f32.mrb[8].mxu0 }
 0x292   : > { %v1658_v52 = vpop.f32.mrb[9].mxu0  ;;  %v1667_v30 = vadd.f32 %v2096_v53, %v3225_v63 }
 0x293   : > { %v1659_v6 = vadd.f32 %v3225_v63, %v1658_v52  ;;  %v2097_v55 = vpop.f32.mrb[10].mxu0 }
 0x294   : > { %v1661_v51 = vpop.f32.mrb[11].mxu0  ;;  %v1795_v40 = vmul.f32 0.01, %v1667_v30  ;;  %v1670_v32 = vadd.f32 %v2097_v55, %v3225_v63  ;;  %vm1763_vm4 = vcmp.ge.f32.partialorder %v1667_v30, 0.0 }
 0x295   : > { %v1793_v15 = vmul.f32 0.01, %v1659_v6  ;;  %v1662_v7 = vadd.f32 %v3225_v63, %v1661_v51  ;;  %v2112_v9 = vpop.f32.mrb[8].mxu1  ;;  %vm1761_vm0 = vcmp.ge.f32.partialorder %v1659_v6, 0.0 }
 0x296   : > { %v1722_v34 = vpop.f32.mrb[9].mxu1  ;;  %v1731_v50 = vadd.f32 %v2112_v9, %v3225_v63  ;;  %v1796_v47 = vmul.f32 0.01, %v1670_v32  ;;  %v1827_v16 = vsel %vm1763_vm4, %v1667_v30, %v1795_v40  ;;  %vm1764_vm6 = vcmp.ge.f32.partialorder %v1670_v32, 0.0 }
 0x297   : > { %v1794_v29 = vmul.f32 0.01, %v1662_v7  ;;  %v1723_v42 = vadd.f32 %v3225_v63, %v1722_v34  ;;  %v2113_v24 = vpop.f32.mrb[10].mxu1  ;;  %v1825_v57 = vsel %vm1761_vm0, %v1659_v6, %v1793_v15  ;;  %vm1762_vm1 = vcmp.ge.f32.partialorder %v1662_v7, 0.0 }
 0x298   : > { %v1725_v3 = vpop.f32.mrb[11].mxu1  ;;  %1857 = vxpose.xlu1.b32.cont [9/16] (narrow) %v1825_v57, 8  ;;  %v1811_v10 = vmul.f32 0.01, %v1731_v50  ;;  %v1734_v8 = vadd.f32 %v2113_v24, %v3225_v63  ;;  %vm1779_vm5 = vcmp.ge.f32.partialorder %v1731_v50, 0.0  ;;  %v1828_v28 = vsel %vm1764_vm6, %v1670_v32, %v1796_v47 }
 0x299   : > { %v1809_v48 = vmul.f32 0.01, %v1723_v42  ;;  %v1726_v1 = vadd.f32 %v3225_v63, %v1725_v3  ;;  %vm1777_vm2 = vcmp.ge.f32.partialorder %v1723_v42, 0.0  ;;  %v1826_v56 = vsel %vm1762_vm1, %v1662_v7, %v1794_v29 }
 0x29a   : > { %v1812_v5 = vmul.f32 0.01, %v1734_v8  ;;  %v1843_v36 = vsel %vm1779_vm5, %v1731_v50, %v1811_v10  ;;  %vm1780_vm7 = vcmp.ge.f32.partialorder %v1734_v8, 0.0 }
 0x29b   : > { %v1810_v0 = vmul.f32 0.01, %v1726_v1  ;;  %v1841_v11 = vsel %vm1777_vm2, %v1723_v42, %v1809_v48  ;;  %vm1778_vm3 = vcmp.ge.f32.partialorder %v1726_v1, 0.0 }
 0x29c   : > { %1889 = vxpose.xlu0.b32.cont [9/16] (narrow) %v1841_v11, 8  ;;  %1858 = vxpose.xlu1.b32.cont [10/16] (narrow) %v1826_v56, 8  ;;  %v1844_v4 = vsel %vm1780_vm7, %v1734_v8, %v1812_v5 }
 0x29d   : > { %v1842_v2 = vsel %vm1778_vm3, %v1726_v1, %v1810_v0 }
 0x2a0   : > { %1890 = vxpose.xlu0.b32.cont [10/16] (narrow) %v1842_v2, 8  ;;  %1859 = vxpose.xlu1.b32.cont [11/16] (narrow) %v1827_v16, 8 }
 0x2a4   : > { %1891 = vxpose.xlu0.b32.cont [11/16] (narrow) %v1843_v36, 8  ;;  %1860 = vxpose.xlu1.b32.cont [12/16] (narrow) %v1828_v28, 8 }
 0x2a8   : > { %1892 = vxpose.xlu0.b32.cont [12/16] (narrow) %v1844_v4, 8 }
 0x2c9   : > { %v2100_v46 = vpop.f32.mrb[12].mxu0 }
 0x2ca   : > { %v1674_v33 = vpop.f32.mrb[13].mxu0  ;;  %v2116_v21 = vpop.f32.mrb[12].mxu1  ;;  %v1683_v31 = vadd.f32 %v2100_v46, %v3225_v63 }
 0x2cb   : > { %v1675_v59 = vadd.f32 %v3225_v63, %v1674_v33  ;;  %v2101_v35 = vpop.f32.mrb[14].mxu0  ;;  %v1738_v60 = vpop.f32.mrb[13].mxu1  ;;  %v1747_v26 = vadd.f32 %v2116_v21, %v3225_v63 }
 0x2cc   : > { %v1739_v49 = vadd.f32 %v3225_v63, %v1738_v60  ;;  %v1677_v13 = vpop.f32.mrb[15].mxu0  ;;  %v2117_v19 = vpop.f32.mrb[14].mxu1  ;;  %v1799_v61 = vmul.f32 0.01, %v1683_v31  ;;  %v1686_v39 = vadd.f32 %v2101_v35, %v3225_v63  ;;  %vm1767_vm12 = vcmp.ge.f32.partialorder %v1683_v31, 0.0 }
 0x2cd   : > { %v1797_v62 = vmul.f32 0.01, %v1675_v59  ;;  %v1678_v20 = vadd.f32 %v3225_v63, %v1677_v13  ;;  %v1741_v12 = vpop.f32.mrb[15].mxu1  ;;  %vm1765_vm8 = vcmp.ge.f32.partialorder %v1675_v59, 0.0  ;;  %v1815_v27 = vmul.f32 0.01, %v1747_v26 }
 0x2ce   : > { %v1813_v43 = vmul.f32 0.01, %v1739_v49  ;;  %v1742_v37 = vadd.f32 %v3225_v63, %v1741_v12  ;;  %vm1781_vm9 = vcmp.ge.f32.partialorder %v1739_v49, 0.0  ;;  %v1750_v14 = vadd.f32 %v2117_v19, %v3225_v63 }
 0x2cf   : > { %v1798_v54 = vmul.f32 0.01, %v1678_v20  ;;  %v1829_v38 = vsel %vm1765_vm8, %v1675_v59, %v1797_v62  ;;  %vm1766_vm10 = vcmp.ge.f32.partialorder %v1678_v20, 0.0  ;;  %vm1783_vm13 = vcmp.ge.f32.partialorder %v1747_v26, 0.0 }
 0x2d0   : > { %v1814_v41 = vmul.f32 0.01, %v1742_v37  ;;  %1861 = vxpose.xlu1.b32.cont [13/16] (narrow) %v1829_v38, 8  ;;  %v1845_v58 = vsel %vm1781_vm9, %v1739_v49, %v1813_v43  ;;  %vm1782_vm11 = vcmp.ge.f32.partialorder %v1742_v37, 0.0  ;;  %v1800_v25 = vmul.f32 0.01, %v1686_v39 }
 0x2d1   : > { %1893 = vxpose.xlu0.b32.cont [13/16] (narrow) %v1845_v58, 8  ;;  %v1830_v45 = vsel %vm1766_vm10, %v1678_v20, %v1798_v54  ;;  %v1831_v22 = vsel %vm1767_vm12, %v1683_v31, %v1799_v61  ;;  %v1816_v23 = vmul.f32 0.01, %v1750_v14  ;;  %v1847_v17 = vsel %vm1783_vm13, %v1747_v26, %v1815_v27 }
 0x2d2   : > { %v1846_v44 = vsel %vm1782_vm11, %v1742_v37, %v1814_v41  ;;  %vm1768_vm14 = vcmp.ge.f32.partialorder %v1686_v39, 0.0  ;;  %vm1784_vm15 = vcmp.ge.f32.partialorder %v1750_v14, 0.0 }
 0x2d3   : > { %v1832_v18 = vsel %vm1768_vm14, %v1686_v39, %v1800_v25  ;;  %v1848_v53 = vsel %vm1784_vm15, %v1750_v14, %v1816_v23 }
 0x2d4   : > { %1862 = vxpose.xlu1.b32.cont [14/16] (narrow) %v1830_v45, 8 }
 0x2d5   : > { %1894 = vxpose.xlu0.b32.cont [14/16] (narrow) %v1846_v44, 8 }
 0x2d8   : > { %1863 = vxpose.xlu1.b32.cont [15/16] (narrow) %v1831_v22, 8 }
 0x2d9   : > { %1895 = vxpose.xlu0.b32.cont [15/16] (narrow) %v1847_v17, 8 }
 0x2dc   : > { %1864 = vxpose.xlu1.b32.end [16/16] (narrow) %v1832_v18, 8 }
 0x2dd   : > { %1896 = vxpose.xlu0.b32.end [16/16] (narrow) %v1848_v53, 8 }
 0x320   : > { %v1865_v63 = vpop.trf.xlu1 }
 0x321   : > { %v1897_v52 = vpop.trf.xlu0 }
 0x322   : > { %v1915_v6 = vcombine.low %v1865_v63, %v1897_v52 }
 0x324   : > { %1917 = vst [vmem:[%s217_s24] sm:$0xff] %v1915_v6 }
 0x325 PF: > { %s14_s15 = sadd.s32 1, %s2190_s15  }
 0x326   : > { %p11_p4 = scmp.ge.s32.totalorder %s14_s15, 4  }
 0x328   :  { %13 = sbr.rel (!%p11_p4) target bundleno = 1 (0x1), region = 69 }

</bundles_post_ra>
